<compile_context>
chip_gen: v5e
topology: v5e:2x2
jax: 0.10.0
libtpu: 0.0.40
codegen_flags: <defaults>
</compile_context>

<pallas_src>
import functools

import jax
import jax.numpy as jnp
from jax.experimental import pallas as pl
from jax.experimental.pallas import tpu as pltpu

_LANE = 128

# (in_features, out_features, relu_after) for every Linear in forward order.
_LAYER_CFG = [
    (38, 76, True),
    (76, 152, True),
    (152, 304, True),
    (304, 304, True),
    (304, 152, True),
    (152, 76, True),
    (76, 38, True),
    (38, 1, False),   # regressor
]
_RELU_FLAGS = tuple(r for _, _, r in _LAYER_CFG)


def _round_up(n, m):
    return (n + m - 1) // m * m


_IN_PAD = _round_up(_LAYER_CFG[0][0], _LANE)     # 38  -> 128
_OUT_PAD = _round_up(_LAYER_CFG[-1][1], _LANE)   # 1   -> 128


# ---------------------------------------------------------------------------
# Fused kernel: the entire MLP in one kernel body (unrolled layer loop).
# ---------------------------------------------------------------------------
def _mlp_kernel(x_ref, *refs, relu_flags):
    out_ref = refs[-1]
    wb_refs = refs[:-1]                 # [w0, b0, w1, b1, ...]
    h = x_ref[...]                      # (TB, 128) f32
    for i, relu in enumerate(relu_flags):
        w = wb_refs[2 * i][...]         # (in_p, out_p) bf16
        b = wb_refs[2 * i + 1][...]     # (1, out_p)    f32
        y = jnp.dot(h.astype(w.dtype), w, preferred_element_type=jnp.float32)
        y = y + b
        if relu:
            y = jnp.maximum(y, 0.0)
        h = y
    out_ref[...] = h.astype(out_ref.dtype)


# ---------------------------------------------------------------------------
# Parameter construction (PyTorch-Linear-style init), zero-padded + bf16.
# ---------------------------------------------------------------------------
def init_params(key, weight_dtype=jnp.bfloat16):
    params = []
    for i, (fan_in, fan_out, _) in enumerate(_LAYER_CFG):
        kw, kb = jax.random.split(jax.random.fold_in(key, i))
        bound = 1.0 / (fan_in ** 0.5)
        # stored as (in, out) so the kernel computes x @ W
        w = jax.random.uniform(kw, (fan_in, fan_out), jnp.float32, -bound, bound)
        b = jax.random.uniform(kb, (fan_out,), jnp.float32, -bound, bound)
        in_p, out_p = _round_up(fan_in, _LANE), _round_up(fan_out, _LANE)
        w_p = jnp.zeros((in_p, out_p), jnp.float32).at[:fan_in, :fan_out].set(w)
        b_p = jnp.zeros((1, out_p), jnp.float32).at[0, :fan_out].set(b)
        params.append((w_p.astype(weight_dtype), b_p))
    return params


# ---------------------------------------------------------------------------
# Forward wrapper: pads batch/features, builds the single fused pallas_call.
# ---------------------------------------------------------------------------
def mlpreg5c_forward(params, x):
    """x: (B, 38) float32 -> (B, 1) float32."""
    B, F = x.shape
    b_pad = _round_up(max(B, 8), 8)
    if b_pad <= 128:
        tb = b_pad                       # one batch tile
    else:
        tb = 128
        b_pad = _round_up(B, tb)
    x_p = jnp.zeros((b_pad, _IN_PAD), jnp.float32).at[:B, :F].set(x)

    flat_params = []
    in_specs = [pl.BlockSpec((tb, _IN_PAD), lambda i: (i, 0))]
    for w, b in params:
        flat_params += [w, b]
        # constant index maps -> weights/biases stay resident across grid steps
        in_specs.append(pl.BlockSpec(w.shape, lambda i: (0, 0)))
        in_specs.append(pl.BlockSpec(b.shape, lambda i: (0, 0)))

    kernel = functools.partial(_mlp_kernel, relu_flags=_RELU_FLAGS)
    out_p = pl.pallas_call(
        kernel,
        out_shape=jax.ShapeDtypeStruct((b_pad, _OUT_PAD), jnp.float32),
        grid=(b_pad // tb,),
        in_specs=in_specs,
        out_specs=pl.BlockSpec((tb, _OUT_PAD), lambda i: (i, 0)),
        compiler_params=pltpu.CompilerParams(
            dimension_semantics=("parallel",),
            vmem_limit_bytes=32 << 20,   # <= 64 MiB so it is legal on v7x too
        ),
    )(x_p, *flat_params)
    return out_p[:B, :1]


# ---------------------------------------------------------------------------
# Pure-JAX reference (same bf16-weight / f32-accumulate math) for checking.
# ---------------------------------------------------------------------------
def _reference_forward(params, x):
    B, F = x.shape
    h = jnp.zeros((B, _IN_PAD), jnp.float32).at[:, :F].set(x)
    for (w, b), relu in zip(params, _RELU_FLAGS):
        h = jnp.dot(h.astype(w.dtype), w, preferred_element_type=jnp.float32) + b
        if relu:
            h = jnp.maximum(h, 0.0)
    return h[:, :1]


if __name__ == "__main__":
    key = jax.random.PRNGKey(0)
    params = init_params(key)

    B = 8
    x = jax.random.normal(jax.random.fold_in(key, 1234), (B, 38), jnp.float32)

    out = jax.block_until_ready(mlpreg5c_forward(params, x))
    ref = _reference_forward(params, x)

    assert out.shape == (B, 1), out.shape
    assert jnp.allclose(out, ref, atol=5e-3, rtol=5e-3), "mismatch vs reference"

    print("KERNEL_OK")
</pallas_src>

<mosaic_0001>
module attributes {stable_mosaic.version = 11 : i64} {
  func.func @_mlp_kernel(%arg0: i32, %arg1: memref<8x128xf32, #tpu.memory_space<vmem>>, %arg2: memref<128x128xbf16, #tpu.memory_space<vmem>>, %arg3: memref<1x128xf32, #tpu.memory_space<vmem>>, %arg4: memref<128x256xbf16, #tpu.memory_space<vmem>>, %arg5: memref<1x256xf32, #tpu.memory_space<vmem>>, %arg6: memref<256x384xbf16, #tpu.memory_space<vmem>>, %arg7: memref<1x384xf32, #tpu.memory_space<vmem>>, %arg8: memref<384x384xbf16, #tpu.memory_space<vmem>>, %arg9: memref<1x384xf32, #tpu.memory_space<vmem>>, %arg10: memref<384x256xbf16, #tpu.memory_space<vmem>>, %arg11: memref<1x256xf32, #tpu.memory_space<vmem>>, %arg12: memref<256x128xbf16, #tpu.memory_space<vmem>>, %arg13: memref<1x128xf32, #tpu.memory_space<vmem>>, %arg14: memref<128x128xbf16, #tpu.memory_space<vmem>>, %arg15: memref<1x128xf32, #tpu.memory_space<vmem>>, %arg16: memref<128x128xbf16, #tpu.memory_space<vmem>>, %arg17: memref<1x128xf32, #tpu.memory_space<vmem>>, %arg18: memref<8x128xf32, #tpu.memory_space<vmem>>) attributes {dimension_semantics = [#tpu.dimension_semantics<parallel>], iteration_bounds = array<i64: 1>, scalar_prefetch = 0 : i64, scratch_operands = 0 : i64, tpu.core_type = #tpu.core_type<tc>, window_params = [{transform_indices = @transform_0, window_bounds = array<i64: 8, 128>}, {pipeline_mode = #tpu.pipeline_mode<synchronous>, transform_indices = @transform_1, window_bounds = array<i64: 128, 128>}, {pipeline_mode = #tpu.pipeline_mode<synchronous>, transform_indices = @transform_2, window_bounds = array<i64: 1, 128>}, {pipeline_mode = #tpu.pipeline_mode<synchronous>, transform_indices = @transform_3, window_bounds = array<i64: 128, 256>}, {pipeline_mode = #tpu.pipeline_mode<synchronous>, transform_indices = @transform_4, window_bounds = array<i64: 1, 256>}, {pipeline_mode = #tpu.pipeline_mode<synchronous>, transform_indices = @transform_5, window_bounds = array<i64: 256, 384>}, {pipeline_mode = #tpu.pipeline_mode<synchronous>, transform_indices = @transform_6, window_bounds = array<i64: 1, 384>}, {pipeline_mode = #tpu.pipeline_mode<synchronous>, transform_indices = @transform_7, window_bounds = array<i64: 384, 384>}, {pipeline_mode = #tpu.pipeline_mode<synchronous>, transform_indices = @transform_8, window_bounds = array<i64: 1, 384>}, {pipeline_mode = #tpu.pipeline_mode<synchronous>, transform_indices = @transform_9, window_bounds = array<i64: 384, 256>}, {pipeline_mode = #tpu.pipeline_mode<synchronous>, transform_indices = @transform_10, window_bounds = array<i64: 1, 256>}, {pipeline_mode = #tpu.pipeline_mode<synchronous>, transform_indices = @transform_11, window_bounds = array<i64: 256, 128>}, {pipeline_mode = #tpu.pipeline_mode<synchronous>, transform_indices = @transform_12, window_bounds = array<i64: 1, 128>}, {pipeline_mode = #tpu.pipeline_mode<synchronous>, transform_indices = @transform_13, window_bounds = array<i64: 128, 128>}, {pipeline_mode = #tpu.pipeline_mode<synchronous>, transform_indices = @transform_14, window_bounds = array<i64: 1, 128>}, {pipeline_mode = #tpu.pipeline_mode<synchronous>, transform_indices = @transform_15, window_bounds = array<i64: 128, 128>}, {pipeline_mode = #tpu.pipeline_mode<synchronous>, transform_indices = @transform_16, window_bounds = array<i64: 1, 128>}, {transform_indices = @transform_17, window_bounds = array<i64: 8, 128>}]} {
    %c0 = arith.constant 0 : index
    %c0_0 = arith.constant 0 : index
    %0 = vector.load %arg1[%c0, %c0_0] : memref<8x128xf32, #tpu.memory_space<vmem>>, vector<8x128xf32>
    %c0_1 = arith.constant 0 : index
    %c0_2 = arith.constant 0 : index
    %1 = vector.load %arg2[%c0_1, %c0_2] : memref<128x128xbf16, #tpu.memory_space<vmem>>, vector<128x128xbf16>
    %c0_3 = arith.constant 0 : index
    %c0_4 = arith.constant 0 : index
    %2 = vector.load %arg3[%c0_3, %c0_4] : memref<1x128xf32, #tpu.memory_space<vmem>>, vector<1x128xf32>
    %3 = arith.truncf %0 : vector<8x128xf32> to vector<8x128xbf16>
    %cst = arith.constant dense<0.000000e+00> : vector<8x128xf32>
    %4 = tpu.matmul %3, %1, %cst {dimension_numbers = #tpu.dot_dimension_numbers<[1], [0], [0], [1], [0, 0, 1, 1], [], []>} : vector<8x128xbf16>, vector<128x128xbf16>, vector<8x128xf32> -> vector<8x128xf32>
    %5 = vector.broadcast %2 : vector<1x128xf32> to vector<8x128xf32>
    %6 = arith.addf %4, %5 : vector<8x128xf32>
    %cst_5 = arith.constant 0.000000e+00 : f32
    %7 = vector.broadcast %cst_5 : f32 to vector<8x128xf32>
    %8 = arith.maximumf %6, %7 : vector<8x128xf32>
    %c0_6 = arith.constant 0 : index
    %c0_7 = arith.constant 0 : index
    %9 = vector.load %arg4[%c0_6, %c0_7] : memref<128x256xbf16, #tpu.memory_space<vmem>>, vector<128x256xbf16>
    %c0_8 = arith.constant 0 : index
    %c0_9 = arith.constant 0 : index
    %10 = vector.load %arg5[%c0_8, %c0_9] : memref<1x256xf32, #tpu.memory_space<vmem>>, vector<1x256xf32>
    %11 = arith.truncf %8 : vector<8x128xf32> to vector<8x128xbf16>
    %cst_10 = arith.constant dense<0.000000e+00> : vector<8x256xf32>
    %12 = tpu.matmul %11, %9, %cst_10 {dimension_numbers = #tpu.dot_dimension_numbers<[1], [0], [0], [1], [0, 0, 1, 1], [], []>} : vector<8x128xbf16>, vector<128x256xbf16>, vector<8x256xf32> -> vector<8x256xf32>
    %13 = vector.broadcast %10 : vector<1x256xf32> to vector<8x256xf32>
    %14 = arith.addf %12, %13 : vector<8x256xf32>
    %cst_11 = arith.constant 0.000000e+00 : f32
    %15 = vector.broadcast %cst_11 : f32 to vector<8x256xf32>
    %16 = arith.maximumf %14, %15 : vector<8x256xf32>
    %c0_12 = arith.constant 0 : index
    %c0_13 = arith.constant 0 : index
    %17 = vector.load %arg6[%c0_12, %c0_13] : memref<256x384xbf16, #tpu.memory_space<vmem>>, vector<256x384xbf16>
    %c0_14 = arith.constant 0 : index
    %c0_15 = arith.constant 0 : index
    %18 = vector.load %arg7[%c0_14, %c0_15] : memref<1x384xf32, #tpu.memory_space<vmem>>, vector<1x384xf32>
    %19 = arith.truncf %16 : vector<8x256xf32> to vector<8x256xbf16>
    %cst_16 = arith.constant dense<0.000000e+00> : vector<8x384xf32>
    %20 = tpu.matmul %19, %17, %cst_16 {dimension_numbers = #tpu.dot_dimension_numbers<[1], [0], [0], [1], [0, 0, 1, 1], [], []>} : vector<8x256xbf16>, vector<256x384xbf16>, vector<8x384xf32> -> vector<8x384xf32>
    %21 = vector.broadcast %18 : vector<1x384xf32> to vector<8x384xf32>
    %22 = arith.addf %20, %21 : vector<8x384xf32>
    %cst_17 = arith.constant 0.000000e+00 : f32
    %23 = vector.broadcast %cst_17 : f32 to vector<8x384xf32>
    %24 = arith.maximumf %22, %23 : vector<8x384xf32>
    %c0_18 = arith.constant 0 : index
    %c0_19 = arith.constant 0 : index
    %25 = vector.load %arg8[%c0_18, %c0_19] : memref<384x384xbf16, #tpu.memory_space<vmem>>, vector<384x384xbf16>
    %c0_20 = arith.constant 0 : index
    %c0_21 = arith.constant 0 : index
    %26 = vector.load %arg9[%c0_20, %c0_21] : memref<1x384xf32, #tpu.memory_space<vmem>>, vector<1x384xf32>
    %27 = arith.truncf %24 : vector<8x384xf32> to vector<8x384xbf16>
    %cst_22 = arith.constant dense<0.000000e+00> : vector<8x384xf32>
    %28 = tpu.matmul %27, %25, %cst_22 {dimension_numbers = #tpu.dot_dimension_numbers<[1], [0], [0], [1], [0, 0, 1, 1], [], []>} : vector<8x384xbf16>, vector<384x384xbf16>, vector<8x384xf32> -> vector<8x384xf32>
    %29 = vector.broadcast %26 : vector<1x384xf32> to vector<8x384xf32>
    %30 = arith.addf %28, %29 : vector<8x384xf32>
    %cst_23 = arith.constant 0.000000e+00 : f32
    %31 = vector.broadcast %cst_23 : f32 to vector<8x384xf32>
    %32 = arith.maximumf %30, %31 : vector<8x384xf32>
    %c0_24 = arith.constant 0 : index
    %c0_25 = arith.constant 0 : index
    %33 = vector.load %arg10[%c0_24, %c0_25] : memref<384x256xbf16, #tpu.memory_space<vmem>>, vector<384x256xbf16>
    %c0_26 = arith.constant 0 : index
    %c0_27 = arith.constant 0 : index
    %34 = vector.load %arg11[%c0_26, %c0_27] : memref<1x256xf32, #tpu.memory_space<vmem>>, vector<1x256xf32>
    %35 = arith.truncf %32 : vector<8x384xf32> to vector<8x384xbf16>
    %cst_28 = arith.constant dense<0.000000e+00> : vector<8x256xf32>
    %36 = tpu.matmul %35, %33, %cst_28 {dimension_numbers = #tpu.dot_dimension_numbers<[1], [0], [0], [1], [0, 0, 1, 1], [], []>} : vector<8x384xbf16>, vector<384x256xbf16>, vector<8x256xf32> -> vector<8x256xf32>
    %37 = vector.broadcast %34 : vector<1x256xf32> to vector<8x256xf32>
    %38 = arith.addf %36, %37 : vector<8x256xf32>
    %cst_29 = arith.constant 0.000000e+00 : f32
    %39 = vector.broadcast %cst_29 : f32 to vector<8x256xf32>
    %40 = arith.maximumf %38, %39 : vector<8x256xf32>
    %c0_30 = arith.constant 0 : index
    %c0_31 = arith.constant 0 : index
    %41 = vector.load %arg12[%c0_30, %c0_31] : memref<256x128xbf16, #tpu.memory_space<vmem>>, vector<256x128xbf16>
    %c0_32 = arith.constant 0 : index
    %c0_33 = arith.constant 0 : index
    %42 = vector.load %arg13[%c0_32, %c0_33] : memref<1x128xf32, #tpu.memory_space<vmem>>, vector<1x128xf32>
    %43 = arith.truncf %40 : vector<8x256xf32> to vector<8x256xbf16>
    %cst_34 = arith.constant dense<0.000000e+00> : vector<8x128xf32>
    %44 = tpu.matmul %43, %41, %cst_34 {dimension_numbers = #tpu.dot_dimension_numbers<[1], [0], [0], [1], [0, 0, 1, 1], [], []>} : vector<8x256xbf16>, vector<256x128xbf16>, vector<8x128xf32> -> vector<8x128xf32>
    %45 = vector.broadcast %42 : vector<1x128xf32> to vector<8x128xf32>
    %46 = arith.addf %44, %45 : vector<8x128xf32>
    %cst_35 = arith.constant 0.000000e+00 : f32
    %47 = vector.broadcast %cst_35 : f32 to vector<8x128xf32>
    %48 = arith.maximumf %46, %47 : vector<8x128xf32>
    %c0_36 = arith.constant 0 : index
    %c0_37 = arith.constant 0 : index
    %49 = vector.load %arg14[%c0_36, %c0_37] : memref<128x128xbf16, #tpu.memory_space<vmem>>, vector<128x128xbf16>
    %c0_38 = arith.constant 0 : index
    %c0_39 = arith.constant 0 : index
    %50 = vector.load %arg15[%c0_38, %c0_39] : memref<1x128xf32, #tpu.memory_space<vmem>>, vector<1x128xf32>
    %51 = arith.truncf %48 : vector<8x128xf32> to vector<8x128xbf16>
    %cst_40 = arith.constant dense<0.000000e+00> : vector<8x128xf32>
    %52 = tpu.matmul %51, %49, %cst_40 {dimension_numbers = #tpu.dot_dimension_numbers<[1], [0], [0], [1], [0, 0, 1, 1], [], []>} : vector<8x128xbf16>, vector<128x128xbf16>, vector<8x128xf32> -> vector<8x128xf32>
    %53 = vector.broadcast %50 : vector<1x128xf32> to vector<8x128xf32>
    %54 = arith.addf %52, %53 : vector<8x128xf32>
    %cst_41 = arith.constant 0.000000e+00 : f32
    %55 = vector.broadcast %cst_41 : f32 to vector<8x128xf32>
    %56 = arith.maximumf %54, %55 : vector<8x128xf32>
    %c0_42 = arith.constant 0 : index
    %c0_43 = arith.constant 0 : index
    %57 = vector.load %arg16[%c0_42, %c0_43] : memref<128x128xbf16, #tpu.memory_space<vmem>>, vector<128x128xbf16>
    %c0_44 = arith.constant 0 : index
    %c0_45 = arith.constant 0 : index
    %58 = vector.load %arg17[%c0_44, %c0_45] : memref<1x128xf32, #tpu.memory_space<vmem>>, vector<1x128xf32>
    %59 = arith.truncf %56 : vector<8x128xf32> to vector<8x128xbf16>
    %cst_46 = arith.constant dense<0.000000e+00> : vector<8x128xf32>
    %60 = tpu.matmul %59, %57, %cst_46 {dimension_numbers = #tpu.dot_dimension_numbers<[1], [0], [0], [1], [0, 0, 1, 1], [], []>} : vector<8x128xbf16>, vector<128x128xbf16>, vector<8x128xf32> -> vector<8x128xf32>
    %61 = vector.broadcast %58 : vector<1x128xf32> to vector<8x128xf32>
    %62 = arith.addf %60, %61 : vector<8x128xf32>
    %c0_47 = arith.constant 0 : index
    %c0_48 = arith.constant 0 : index
    %63 = vector.load %arg18[%c0_47, %c0_48] : memref<8x128xf32, #tpu.memory_space<vmem>>, vector<8x128xf32>
    tpu.vector_store %arg18[%c0_47, %c0_48], %62 {strides = array<i32>} : memref<8x128xf32, #tpu.memory_space<vmem>>, vector<8x128xf32>,
    return
  }
  func.func @transform_0(%arg0: i32) -> (i32, i32) {
    %c0_i32 = arith.constant 0 : i32
    %c0_i32_0 = arith.constant 0 : i32
    return %arg0, %c0_i32 : i32, i32
  }
  func.func @transform_1(%arg0: i32) -> (i32, i32) {
    %c0_i32 = arith.constant 0 : i32
    %c0_i32_0 = arith.constant 0 : i32
    %c0_i32_1 = arith.constant 0 : i32
    return %c0_i32, %c0_i32_0 : i32, i32
  }
  func.func @transform_2(%arg0: i32) -> (i32, i32) {
    %c0_i32 = arith.constant 0 : i32
    %c0_i32_0 = arith.constant 0 : i32
    %c0_i32_1 = arith.constant 0 : i32
    return %c0_i32, %c0_i32_0 : i32, i32
  }
  func.func @transform_3(%arg0: i32) -> (i32, i32) {
    %c0_i32 = arith.constant 0 : i32
    %c0_i32_0 = arith.constant 0 : i32
    %c0_i32_1 = arith.constant 0 : i32
    return %c0_i32, %c0_i32_0 : i32, i32
  }
  func.func @transform_4(%arg0: i32) -> (i32, i32) {
    %c0_i32 = arith.constant 0 : i32
    %c0_i32_0 = arith.constant 0 : i32
    %c0_i32_1 = arith.constant 0 : i32
    return %c0_i32, %c0_i32_0 : i32, i32
  }
  func.func @transform_5(%arg0: i32) -> (i32, i32) {
    %c0_i32 = arith.constant 0 : i32
    %c0_i32_0 = arith.constant 0 : i32
    %c0_i32_1 = arith.constant 0 : i32
    return %c0_i32, %c0_i32_0 : i32, i32
  }
  func.func @transform_6(%arg0: i32) -> (i32, i32) {
    %c0_i32 = arith.constant 0 : i32
    %c0_i32_0 = arith.constant 0 : i32
    %c0_i32_1 = arith.constant 0 : i32
    return %c0_i32, %c0_i32_0 : i32, i32
  }
  func.func @transform_7(%arg0: i32) -> (i32, i32) {
    %c0_i32 = arith.constant 0 : i32
    %c0_i32_0 = arith.constant 0 : i32
    %c0_i32_1 = arith.constant 0 : i32
    return %c0_i32, %c0_i32_0 : i32, i32
  }
  func.func @transform_8(%arg0: i32) -> (i32, i32) {
    %c0_i32 = arith.constant 0 : i32
    %c0_i32_0 = arith.constant 0 : i32
    %c0_i32_1 = arith.constant 0 : i32
    return %c0_i32, %c0_i32_0 : i32, i32
  }
  func.func @transform_9(%arg0: i32) -> (i32, i32) {
    %c0_i32 = arith.constant 0 : i32
    %c0_i32_0 = arith.constant 0 : i32
    %c0_i32_1 = arith.constant 0 : i32
    return %c0_i32, %c0_i32_0 : i32, i32
  }
  func.func @transform_10(%arg0: i32) -> (i32, i32) {
    %c0_i32 = arith.constant 0 : i32
    %c0_i32_0 = arith.constant 0 : i32
    %c0_i32_1 = arith.constant 0 : i32
    return %c0_i32, %c0_i32_0 : i32, i32
  }
  func.func @transform_11(%arg0: i32) -> (i32, i32) {
    %c0_i32 = arith.constant 0 : i32
    %c0_i32_0 = arith.constant 0 : i32
    %c0_i32_1 = arith.constant 0 : i32
    return %c0_i32, %c0_i32_0 : i32, i32
  }
  func.func @transform_12(%arg0: i32) -> (i32, i32) {
    %c0_i32 = arith.constant 0 : i32
    %c0_i32_0 = arith.constant 0 : i32
    %c0_i32_1 = arith.constant 0 : i32
    return %c0_i32, %c0_i32_0 : i32, i32
  }
  func.func @transform_13(%arg0: i32) -> (i32, i32) {
    %c0_i32 = arith.constant 0 : i32
    %c0_i32_0 = arith.constant 0 : i32
    %c0_i32_1 = arith.constant 0 : i32
    return %c0_i32, %c0_i32_0 : i32, i32
  }
  func.func @transform_14(%arg0: i32) -> (i32, i32) {
    %c0_i32 = arith.constant 0 : i32
    %c0_i32_0 = arith.constant 0 : i32
    %c0_i32_1 = arith.constant 0 : i32
    return %c0_i32, %c0_i32_0 : i32, i32
  }
  func.func @transform_15(%arg0: i32) -> (i32, i32) {
    %c0_i32 = arith.constant 0 : i32
    %c0_i32_0 = arith.constant 0 : i32
    %c0_i32_1 = arith.constant 0 : i32
    return %c0_i32, %c0_i32_0 : i32, i32
  }
  func.func @transform_16(%arg0: i32) -> (i32, i32) {
    %c0_i32 = arith.constant 0 : i32
    %c0_i32_0 = arith.constant 0 : i32
    %c0_i32_1 = arith.constant 0 : i32
    return %c0_i32, %c0_i32_0 : i32, i32
  }
  func.func @transform_17(%arg0: i32) -> (i32, i32) {
    %c0_i32 = arith.constant 0 : i32
    %c0_i32_0 = arith.constant 0 : i32
    return %arg0, %c0_i32 : i32, i32
  }
}

</mosaic_0001>

<bundles_post_ra>
// kernel: tpu_custom_call.1
= control target key start
LH: loop header
LB: loop body
LE: loop exit
PB: predicated region body
PF: predicated region fallthrough
CT: control target
= control target key end

     0   :  { %s3824_s0 = inlined_call_operand.hbm [shape: f32[8,128], index: 0, kind: input, shape index: {}]   ;;  %s3825_s1 = inlined_call_operand.hbm [shape: bf16[128,128], index: 1, kind: input, shape index: {}]   ;;  %s3826_s2 = inlined_call_operand.hbm [shape: f32[1,128], index: 2, kind: input, shape index: {}]   ;;  %s3827_s3 = inlined_call_operand.hbm [shape: bf16[128,256], index: 3, kind: input, shape index: {}]   ;;  %s3828_s4 = inlined_call_operand.hbm [shape: f32[1,256], index: 4, kind: input, shape index: {}]   ;;  %s3829_s5 = inlined_call_operand.hbm [shape: bf16[256,384], index: 5, kind: input, shape index: {}]   ;;  %s3830_s6 = inlined_call_operand.vmem [shape: f32[1,384], index: 6, kind: input, shape index: {}]   ;;  %s3831_s7 = inlined_call_operand.hbm [shape: bf16[384,384], index: 7, kind: input, shape index: {}]   ;;  %s3832_s8 = inlined_call_operand.vmem [shape: f32[1,384], index: 8, kind: input, shape index: {}]   ;;  %s3833_s9 = inlined_call_operand.hbm [shape: bf16[384,256], index: 9, kind: input, shape index: {}]   ;;  %s3834_s10 = inlined_call_operand.vmem [shape: f32[1,256], index: 10, kind: input, shape index: {}]   ;;  %s3835_s11 = inlined_call_operand.hbm [shape: bf16[256,128], index: 11, kind: input, shape index: {}]   ;;  %s3836_s12 = inlined_call_operand.vmem [shape: f32[1,128], index: 12, kind: input, shape index: {}]   ;;  %s3837_s13 = inlined_call_operand.hbm [shape: bf16[128,128], index: 13, kind: input, shape index: {}]   ;;  %s3838_s14 = inlined_call_operand.vmem [shape: f32[1,128], index: 14, kind: input, shape index: {}]   ;;  %s3839_s15 = inlined_call_operand.hbm [shape: bf16[128,128], index: 15, kind: input, shape index: {}]   ;;  %s3840_s16 = inlined_call_operand.vmem [shape: f32[1,128], index: 16, kind: input, shape index: {}]   ;;  %s3841_s17 = inlined_call_operand.hbm [shape: f32[8,128], index: 17, kind: output, shape index: {}]  }
   0x1   :  { %3845 = sst [smem:[#allocation28_spill]] %s3824_s0 }
   0x2   :  { %3846 = sst [smem:[#allocation29_spill]] %s3825_s1 }
   0x3   :  { %3847 = sst [smem:[#allocation30_spill]] %s3841_s17 }
   0x4   :  { %22 = vsyncpa [#allocation3], 0 }
   0x5   :  { %23 = vsyncpa [#allocation6], 0 }
   0x6   :  { %24 = vsyncpa [#allocation9], 0 }
   0x7   :  { %25 = vsyncpa [#allocation12], 0 }
   0x8   :  { %26 = vsyncpa [#allocation15], 0 }
   0x9   :  { %27 = vsyncpa [#allocation18], 0  ;;  %s3848_s26 = sld [smem:[#allocation29_spill]] }
   0xf   :  { %s44_s27 = sshll.u32 %s3848_s26, 4  ;;  %s45_s27 = int_to_ptr.hbm [resolvable:$true] %s44_s27 }
  0x10   :  { %28 = vsyncpa [#allocation4], 0  ;;  %s3629_s28 = smov [#allocation5]   ;;  %s68_s18 = sshll.u32 %s3827_s3, 4  ;;  %s69_s18 = int_to_ptr.hbm [resolvable:$true] %s68_s18 }
  0x11   :  { %s46_s29 = sshll.u32 %s3629_s28, 4  ;;  %s3842_s19 = smov 64   ;;  %s47_s29 = int_to_ptr.vmem [resolvable:$true] %s46_s29 }
  0x12   :  { %s3631_s1 = smov 4   ;;  %s3632_s20 = smov [#allocation8]  }
  0x13   :  { %52 = dma.hbm_to_vmem [thread:$0]  %s45_s27, 1024, %s47_s29, [#allocation6], %s3842_s19, %s3842_s19, %s3631_s1  }
  0x14   :  { %s70_s21 = sshll.u32 %s3632_s20, 4  ;;  %s3633_s22 = smov 128   ;;  %s71_s21 = int_to_ptr.vmem [resolvable:$true] %s70_s21 }
  0x15   :  { %s3634_s23 = smov 8   ;;  %s92_s26 = sshll.u32 %s3829_s5, 4  ;;  %s93_s26 = int_to_ptr.hbm [resolvable:$true] %s92_s26 }
  0x16   :  { %76 = dma.hbm_to_vmem [thread:$0]  %s69_s18, 2048, %s71_s21, [#allocation9], %s3633_s22, %s3633_s22, %s3634_s23  }
  0x17   :  { %s3635_s28 = smov [#allocation11]   ;;  %s122_s17 = sshll.u32 %s3833_s9, 4  ;;  %s123_s17 = int_to_ptr.hbm [resolvable:$true] %s122_s17 }
  0x18   :  { %s94_s3 = sshll.u32 %s3635_s28, 4  ;;  %s3844_s27 = smov 192   ;;  %s95_s3 = int_to_ptr.vmem [resolvable:$true] %s94_s3 }
  0x19   :  { %s3637_s29 = smov 12   ;;  %s3638_s18 = smov [#allocation14]  }
  0x1a   :  { %100 = dma.hbm_to_vmem [thread:$0]  %s93_s26, 6144, %s95_s3, [#allocation12], %s3844_s27, %s3844_s27, %s3637_s29  }
  0x1b   :  { %s124_s20 = sshll.u32 %s3638_s18, 4  ;;  %s152_s5 = sshll.u32 %s3837_s13, 4  ;;  %s125_s20 = int_to_ptr.vmem [resolvable:$true] %s124_s20  ;;  %s153_s5 = int_to_ptr.hbm [resolvable:$true] %s152_s5 }
  0x1c   :  { %130 = dma.hbm_to_vmem [thread:$0]  %s123_s17, 6144, %s125_s20, [#allocation15], %s3633_s22, %s3633_s22, %s3634_s23  }
  0x1d   :  { %s3849_s0 = sld [smem:[#allocation28_spill]]  ;;  %s3639_s30 = smov [#allocation17]  }
  0x1e   :  { %s154_s19 = sshll.u32 %s3639_s30, 4  ;;  %s3850_s26 = smov 64   ;;  %s155_s19 = int_to_ptr.vmem [resolvable:$true] %s154_s19 }
  0x1f   :  { %160 = dma.hbm_to_vmem [thread:$0]  %s153_s5, 1024, %s155_s19, [#allocation18], %s3850_s26, %s3850_s26, %s3631_s1  }
  0x20   :  { %s3640_s3 = smov [#allocation2]   ;;  %s58_s13 = sshll.u32 %s3826_s2, 4  ;;  %s59_s13 = int_to_ptr.hbm [resolvable:$true] %s58_s13 }
  0x21   :  { %s36_s18 = sshll.u32 %s3640_s3, 4  ;;  %s82_s23 = sshll.u32 %s3828_s4, 4  ;;  %s37_s18 = int_to_ptr.vmem [resolvable:$true] %s36_s18  ;;  %s83_s23 = int_to_ptr.hbm [resolvable:$true] %s82_s23 }
  0x22   :  { %s3641_s20 = smov [#allocation7]   ;;  %s3642_s25 = smov [#allocation10]  }
  0x23   :  { %s34_s9 = sshll.u32 %s3849_s0, 4  ;;  %s60_s24 = sshll.u32 %s3641_s20, 4  ;;  %s35_s9 = int_to_ptr.hbm [resolvable:$true] %s34_s9  ;;  %s61_s24 = int_to_ptr.vmem [resolvable:$true] %s60_s24 }
  0x24   :  { %39 = dma.hbm_to_vmem [thread:$0]  %s35_s9, 128, %s37_s18, [#allocation3]  }
  0x25   :  { %63 = dma.hbm_to_vmem [thread:$0]  %s59_s13, 16, %s61_s24, [#allocation6]  }
  0x26   :  { %s84_s19 = sshll.u32 %s3642_s25, 4  ;;  %s107_s0 = sshll.u32 %s3831_s7, 4  ;;  %s85_s19 = int_to_ptr.vmem [resolvable:$true] %s84_s19  ;;  %s108_s0 = int_to_ptr.hbm [resolvable:$true] %s107_s0 }
  0x27   :  { %87 = dma.hbm_to_vmem [thread:$0]  %s83_s23, 32, %s85_s19, [#allocation9]  }
  0x28   :  { %s137_s9 = sshll.u32 %s3835_s11, 4  ;;  %s3643_s30 = smov [#allocation13]   ;;  %s138_s9 = int_to_ptr.hbm [resolvable:$true] %s137_s9 }
  0x29   :  { %s109_s4 = sshll.u32 %s3643_s30, 4  ;;  %s3851_s3 = smov 192   ;;  %s110_s4 = int_to_ptr.vmem [resolvable:$true] %s109_s4 }
  0x2a   :  { %115 = dma.hbm_to_vmem [thread:$0]  %s108_s0, 9216, %s110_s4, [#allocation12], %s3851_s3, %s3851_s3, %s3637_s29  }
  0x2b   :  { %s3644_s18 = smov [#allocation16]   ;;  %s167_s7 = sshll.u32 %s3839_s15, 4  ;;  %s168_s7 = int_to_ptr.hbm [resolvable:$true] %s167_s7 }
  0x2c   :  { %s139_s21 = sshll.u32 %s3644_s18, 4  ;;  %s3645_s11 = smov [#allocation19]   ;;  %s140_s21 = int_to_ptr.vmem [resolvable:$true] %s139_s21 }
  0x2d   :  { %145 = dma.hbm_to_vmem [thread:$0]  %s138_s9, 2048, %s140_s21, [#allocation15], %s3850_s26, %s3850_s26, %s3631_s1  }
  0x2e   :  { %s169_s22 = sshll.u32 %s3645_s11, 4  ;;  %s170_s22 = int_to_ptr.vmem [resolvable:$true] %s169_s22 }
  0x2f   :  { %175 = dma.hbm_to_vmem [thread:$0]  %s168_s7, 1024, %s170_s22, [#allocation18], %s3850_s26, %s3850_s26, %s3631_s1  }
  0x30   :  { %3615 = dma.done.wait [#allocation3], 128  }
  0x31   :  { %3616 = vsyncadd [#allocation3], 4294967168 }
  0x32   :  { %3617 = dma.done.wait [#allocation6], 1040  }
  0x33   :  { %3618 = vsyncadd [#allocation6], 4294966256 }
  0x34   :  { %3619 = dma.done.wait [#allocation9], 2080  }
  0x35   :  { %3620 = vsyncadd [#allocation9], 4294965216 }
  0x36   :  { %3621 = dma.done.wait [#allocation12], 15360  }
  0x37   :  { %3622 = vsyncadd [#allocation12], 4294951936 }
  0x38   :  { %3623 = dma.done.wait [#allocation15], 8192  }
  0x39   :  { %3624 = vsyncadd [#allocation15], 4294959104 }
  0x3a   :  { %3625 = dma.done.wait [#allocation18], 2048  }
  0x3b   :  { %3626 = vsyncadd [#allocation18], 4294965248  ;;  %v3088_v0 = vld [vmem:[#allocation5 + $0x38] sm:$0xff]  ;;  %v3087_v1 = vld [vmem:[#allocation5 + $0x30] sm:$0xff]  ;;  %s3646_s19 = smov [#allocation20]   ;;  %s3852_s2 = sld [smem:[#allocation30_spill]] }
  0x3c   :  { %292 = vmatpush.bf16.msra.mxu0 %v3088_v0  ;;  %v2275_v2 = vld [vmem:[#allocation8 + $0x70] sm:$0xf]  ;;  %v3104_v3 = vld [vmem:[#allocation8 + $0x74] sm:$0xf0]  ;;  %v3103_v4 = vld [vmem:[#allocation8 + $0x74] sm:$0xf] }
  0x3d   :  { %v2276_v5 = vor.u32 %v3104_v3, %v2275_v2  ;;  %v2277_v6 = vld [vmem:[#allocation8 + $0x78] sm:$0xf0]  ;;  %v2267_v7 = vld [vmem:[#allocation8 + $0x60] sm:$0xf]  ;;  %v3102_v8 = vld [vmem:[#allocation8 + $0x64] sm:$0xf0] }
  0x3e   :  { %v2280_v9 = vor.u32 %v3103_v4, %v2277_v6  ;;  %v3101_v10 = vld [vmem:[#allocation8 + $0x64] sm:$0xf]  ;;  %v2269_v11 = vld [vmem:[#allocation8 + $0x68] sm:$0xf0]  ;;  %v2268_v13 = vor.u32 %v3102_v8, %v2267_v7  ;;  %v2259_v15 = vld [vmem:[#allocation8 + $0x50] sm:$0xf] }
  0x3f   :  { %v3086_v12 = vld [vmem:[#allocation5 + $0x28] sm:$0xff]  ;;  %409 = vmatpush.bf16.msra.mxu1 %v2276_v5  ;;  %v2272_v14 = vor.u32 %v3101_v10, %v2269_v11  ;;  %v3100_v16 = vld [vmem:[#allocation8 + $0x54] sm:$0xf0]  ;;  %v3099_v17 = vld [vmem:[#allocation8 + $0x54] sm:$0xf]  ;;  %s2168_s5 = sshll.u32 %s3646_s19, 4  ;;  %s2169_s5 = int_to_ptr.vmem [resolvable:$true] %s2168_s5 }
  0x40   :  { %293 = vmatpush.bf16.msra.mxu0 %v3087_v1  ;;  %422 = vmatpush.bf16.msra.mxu2 %v2280_v9  ;;  %v2261_v18 = vld [vmem:[#allocation8 + $0x58] sm:$0xf0]  ;;  %v2260_v20 = vor.u32 %v3100_v16, %v2259_v15  ;;  %v2251_v21 = vld [vmem:[#allocation8 + $0x40] sm:$0xf]  ;;  %v3098_v22 = vld [vmem:[#allocation8 + $0x44] sm:$0xf0] }
  0x41   :  { %v3085_v19 = vld [vmem:[#allocation5 + $0x20] sm:$0xff]  ;;  %v2264_v23 = vor.u32 %v3099_v17, %v2261_v18  ;;  %v2253_v25 = vld [vmem:[#allocation8 + $0x48] sm:$0xf0]  ;;  %v3084_v26 = vld [vmem:[#allocation5 + $0x18] sm:$0xff]  ;;  %v2252_v27 = vor.u32 %v3098_v22, %v2251_v21  ;;  %s2170_s27 = sshll.u32 %s3852_s2, 4  ;;  %s2171_s27 = int_to_ptr.hbm [resolvable:$true] %s2170_s27 }
  0x42   :  { %v3097_v24 = vld [vmem:[#allocation8 + $0x44] sm:$0xf]  ;;  %v2243_v29 = vld [vmem:[#allocation8 + $0x30] sm:$0xf]  ;;  %v3096_v30 = vld [vmem:[#allocation8 + $0x34] sm:$0xf0] }
  0x43   :  { %410 = vmatpush.bf16.msra.mxu1 %v2268_v13  ;;  %v2256_v28 = vor.u32 %v3097_v24, %v2253_v25  ;;  %v3095_v31 = vld [vmem:[#allocation8 + $0x34] sm:$0xf]  ;;  %v2245_v32 = vld [vmem:[#allocation8 + $0x38] sm:$0xf0]  ;;  %v2244_v34 = vor.u32 %v3096_v30, %v2243_v29  ;;  %v2235_v36 = vld [vmem:[#allocation8 + $0x20] sm:$0xf] }
  0x44   :  { %294 = vmatpush.bf16.msra.mxu0 %v3086_v12  ;;  %423 = vmatpush.bf16.msra.mxu2 %v2272_v14  ;;  %v3083_v33 = vld [vmem:[#allocation5 + $0x10] sm:$0xff]  ;;  %v2248_v35 = vor.u32 %v3095_v31, %v2245_v32  ;;  %v3094_v37 = vld [vmem:[#allocation8 + $0x24] sm:$0xf0]  ;;  %v3093_v38 = vld [vmem:[#allocation8 + $0x24] sm:$0xf] }
  0x45   :  { %v2237_v39 = vld [vmem:[#allocation8 + $0x28] sm:$0xf0]  ;;  %v2236_v41 = vor.u32 %v3094_v37, %v2235_v36  ;;  %v3081_v43 = vld [vmem:[#allocation5] sm:$0xff]  ;;  %v222_v44 = vld [vmem:[#allocation2] sm:$0xff] }
  0x46   :  { %v3082_v40 = vld [vmem:[#allocation5 + $0x8] sm:$0xff]  ;;  %v2240_v42 = vor.u32 %v3093_v38, %v2237_v39  ;;  %v240_v45 = vpack.c.bf16 %v222_v44, %v222_v44  ;;  %v2227_v46 = vld [vmem:[#allocation8 + $0x10] sm:$0xf]  ;;  %v3092_v47 = vld [vmem:[#allocation8 + $0x14] sm:$0xf0] }
  0x47   :  { %411 = vmatpush.bf16.msra.mxu1 %v2260_v20  ;;  %v3091_v48 = vld [vmem:[#allocation8 + $0x14] sm:$0xf]  ;;  %v2228_v49 = vor.u32 %v3092_v47, %v2227_v46  ;;  %v2229_v50 = vld [vmem:[#allocation8 + $0x18] sm:$0xf0]  ;;  %v2219_v52 = vld [vmem:[#allocation8] sm:$0xf] }
  0x48   :  { %295 = vmatpush.bf16.msra.mxu0 %v3085_v19  ;;  %424 = vmatpush.bf16.msra.mxu2 %v2264_v23  ;;  %v2232_v51 = vor.u32 %v3091_v48, %v2229_v50  ;;  %v3090_v53 = vld [vmem:[#allocation8 + $0x4] sm:$0xf0]  ;;  %v3089_v54 = vld [vmem:[#allocation8 + $0x4] sm:$0xf]  ;;  %v2221_v56 = vld [vmem:[#allocation8 + $0x8] sm:$0xf0] }
  0x49   :  { %v2220_v55 = vor.u32 %v3090_v53, %v2219_v52  ;;  %v2224_v57 = vor.u32 %v3089_v54, %v2221_v56  ;;  %v2367_v58 = vld [vmem:[#allocation11 + $0xa8] sm:$0xf]  ;;  %v3127_v59 = vld [vmem:[#allocation11 + $0xb0] sm:$0xf0]  ;;  %v2355_v60 = vld [vmem:[#allocation11 + $0x90] sm:$0xf] }
  0x4a   :  { %v2368_v61 = vor.u32 %v3127_v59, %v2367_v58  ;;  %v3124_v62 = vld [vmem:[#allocation11 + $0x98] sm:$0xf0]  ;;  %v2463_v63 = vld [vmem:[#allocation11 + $0x168] sm:$0xf]  ;;  %v3151_v0 = vld [vmem:[#allocation11 + $0x170] sm:$0xf0] }
  0x4b   :  { %412 = vmatpush.bf16.msra.mxu1 %v2252_v27  ;;  %v2464_v1 = vor.u32 %v3151_v0, %v2463_v63  ;;  %v2451_v2 = vld [vmem:[#allocation11 + $0x150] sm:$0xf]  ;;  %v2356_v3 = vor.u32 %v3124_v62, %v2355_v60  ;;  %v2343_v4 = vld [vmem:[#allocation11 + $0x78] sm:$0xf]  ;;  %v3148_v5 = vld [vmem:[#allocation11 + $0x158] sm:$0xf0] }
  0x4c   :  { %296 = vmatpush.bf16.msra.mxu0 %v3084_v26  ;;  %425 = vmatpush.bf16.msra.mxu2 %v2256_v28  ;;  %v3121_v6 = vld [vmem:[#allocation11 + $0x80] sm:$0xf0]  ;;  %v2452_v7 = vor.u32 %v3148_v5, %v2451_v2  ;;  %v3126_v8 = vld [vmem:[#allocation11 + $0xac] sm:$0xf]  ;;  %v2369_v9 = vld [vmem:[#allocation11 + $0xb4] sm:$0xf0] }
  0x4d   :  { %767 = vmatpush.bf16.msra.mxu3 %v2368_v61  ;;  %v2372_v10 = vor.u32 %v3126_v8, %v2369_v9  ;;  %v2439_v11 = vld [vmem:[#allocation11 + $0x138] sm:$0xf]  ;;  %v3145_v12 = vld [vmem:[#allocation11 + $0x140] sm:$0xf0]  ;;  %v3123_v13 = vld [vmem:[#allocation11 + $0x94] sm:$0xf]  ;;  %v2344_v15 = vor.u32 %v3121_v6, %v2343_v4 }
  0x4e   :  { %v2357_v14 = vld [vmem:[#allocation11 + $0x9c] sm:$0xf0]  ;;  %v3150_v17 = vld [vmem:[#allocation11 + $0x16c] sm:$0xf]  ;;  %v2465_v18 = vld [vmem:[#allocation11 + $0x174] sm:$0xf0]  ;;  %v2440_v21 = vor.u32 %v3145_v12, %v2439_v11 }
  0x4f   :  { %413 = vmatpush.bf16.msra.mxu1 %v2244_v34  ;;  %v2360_v16 = vor.u32 %v3123_v13, %v2357_v14  ;;  %v2331_v19 = vld [vmem:[#allocation11 + $0x60] sm:$0xf]  ;;  %v3118_v20 = vld [vmem:[#allocation11 + $0x68] sm:$0xf0]  ;;  %v2468_v22 = vor.u32 %v3150_v17, %v2465_v18  ;;  %v3120_v23 = vld [vmem:[#allocation11 + $0x7c] sm:$0xf] }
  0x50   :  { %297 = vmatpush.bf16.msra.mxu0 %v3083_v33  ;;  %426 = vmatpush.bf16.msra.mxu2 %v2248_v35  ;;  %v2427_v24 = vld [vmem:[#allocation11 + $0x120] sm:$0xf]  ;;  %v3142_v25 = vld [vmem:[#allocation11 + $0x128] sm:$0xf0]  ;;  %v2345_v26 = vld [vmem:[#allocation11 + $0x84] sm:$0xf0]  ;;  %v2332_v29 = vor.u32 %v3118_v20, %v2331_v19 }
  0x51   :  { %768 = vmatpush.bf16.msra.mxu3 %v2356_v3  ;;  %v3147_v27 = vld [vmem:[#allocation11 + $0x154] sm:$0xf]  ;;  %v2453_v28 = vld [vmem:[#allocation11 + $0x15c] sm:$0xf0]  ;;  %v2319_v30 = vld [vmem:[#allocation11 + $0x48] sm:$0xf]  ;;  %v2348_v32 = vor.u32 %v3120_v23, %v2345_v26  ;;  %v2428_v34 = vor.u32 %v3142_v25, %v2427_v24 }
  0x52   :  { %v3115_v31 = vld [vmem:[#allocation11 + $0x50] sm:$0xf0]  ;;  %v2456_v33 = vor.u32 %v3147_v27, %v2453_v28  ;;  %v3117_v35 = vld [vmem:[#allocation11 + $0x64] sm:$0xf]  ;;  %v2333_v36 = vld [vmem:[#allocation11 + $0x6c] sm:$0xf0] }
  0x53   :  { %414 = vmatpush.bf16.msra.mxu1 %v2236_v41  ;;  %v3144_v37 = vld [vmem:[#allocation11 + $0x13c] sm:$0xf]  ;;  %v2415_v38 = vld [vmem:[#allocation11 + $0x108] sm:$0xf]  ;;  %v3139_v39 = vld [vmem:[#allocation11 + $0x110] sm:$0xf0] }
  0x54   :  { %298 = vmatpush.bf16.msra.mxu0 %v3082_v40  ;;  %427 = vmatpush.bf16.msra.mxu2 %v2240_v42  ;;  %v2441_v40 = vld [vmem:[#allocation11 + $0x144] sm:$0xf0]  ;;  %v2320_v42 = vor.u32 %v3115_v31, %v2319_v30  ;;  %v3112_v44 = vld [vmem:[#allocation11 + $0x38] sm:$0xf0]  ;;  %v3114_v46 = vld [vmem:[#allocation11 + $0x4c] sm:$0xf]  ;;  %v2416_v47 = vor.u32 %v3139_v39, %v2415_v38 }
  0x55   :  { %769 = vmatpush.bf16.msra.mxu3 %v2344_v15  ;;  %v2444_v41 = vor.u32 %v3144_v37, %v2441_v40  ;;  %v2321_v48 = vld [vmem:[#allocation11 + $0x54] sm:$0xf0]  ;;  %v2429_v50 = vld [vmem:[#allocation11 + $0x12c] sm:$0xf0]  ;;  %v3136_v52 = vld [vmem:[#allocation11 + $0xf8] sm:$0xf0] }
  0x56   :  { %v2324_v56 = vor.u32 %v3114_v46, %v2321_v48  ;;  %v2417_v58 = vld [vmem:[#allocation11 + $0x114] sm:$0xf0]  ;;  %v3109_v59 = vld [vmem:[#allocation11 + $0x20] sm:$0xf0]  ;;  %v3111_v61 = vld [vmem:[#allocation11 + $0x34] sm:$0xf] }
  0x57   :  { %415 = vmatpush.bf16.msra.mxu1 %v2228_v49  ;;  %v3141_v49 = vld [vmem:[#allocation11 + $0x124] sm:$0xf]  ;;  %v2309_v62 = vld [vmem:[#allocation11 + $0x3c] sm:$0xf0]  ;;  %v3323_v63 = vld [vmem:[#allocation7] ss:$0 sm:$0xff] }
  0x58   :  { %299 = vmatpush.bf16.msra.mxu0 %v3081_v43  ;;  %428 = vmatpush.bf16.msra.mxu2 %v2232_v51  ;;  %v2307_v43 = vld [vmem:[#allocation11 + $0x30] sm:$0xf]  ;;  %v2432_v53 = vor.u32 %v3141_v49, %v2429_v50  ;;  %v2391_v0 = vld [vmem:[#allocation11 + $0xd8] sm:$0xf]  ;;  %v2312_v4 = vor.u32 %v3111_v61, %v2309_v62  ;;  %v2283_v6 = vld [vmem:[#allocation11] sm:$0xf] }
  0x59   :  { %770 = vmatpush.bf16.msra.mxu3 %v2332_v29  ;;  %v2403_v51 = vld [vmem:[#allocation11 + $0xf0] sm:$0xf]  ;;  %v2308_v54 = vor.u32 %v3112_v44, %v2307_v43  ;;  %v2379_v11 = vld [vmem:[#allocation11 + $0xc0] sm:$0xf]  ;;  %v3130_v12 = vld [vmem:[#allocation11 + $0xc8] sm:$0xf0] }
  0x5a   :  { %v2404_v60 = vor.u32 %v3136_v52, %v2403_v51  ;;  %v3128_v13 = vld [vmem:[#allocation11 + $0xb8] sm:$0xf0]  ;;  %v2471_v14 = vld [vmem:[#allocation11 + $0x170] sm:$0xf]  ;;  %v2380_v18 = vor.u32 %v3130_v12, %v2379_v11  ;;  %v3125_v23 = vld [vmem:[#allocation11 + $0xa0] sm:$0xf0] }
  0x5b   :  { %300 = vmatmul.bf16.vlgmr.msra.gmra.mxu0 %v240_v45  ;;  %416 = vmatpush.bf16.msra.mxu1 %v2220_v55  ;;  %v2336_v45 = vor.u32 %v3117_v35, %v2333_v36  ;;  %v2295_v55 = vld [vmem:[#allocation11 + $0x18] sm:$0xf]  ;;  %v3152_v15 = vld [vmem:[#allocation11 + $0x178] sm:$0xf0]  ;;  %v2297_v27 = vld [vmem:[#allocation11 + $0x24] sm:$0xf0] }
  0x5c   :  { %429 = vmatpush.bf16.msra.mxu2 %v2224_v57  ;;  %780 = vmatpush.bf16.msrb.mxu0 %v2464_v1  ;;  %v3138_v57 = vld [vmem:[#allocation11 + $0x10c] sm:$0xf]  ;;  %v3133_v1 = vld [vmem:[#allocation11 + $0xe0] sm:$0xf0]  ;;  %v2296_v3 = vor.u32 %v3109_v59, %v2295_v55  ;;  %v3108_v26 = vld [vmem:[#allocation11 + $0x1c] sm:$0xf] }
  0x5d   :  { %771 = vmatpush.bf16.msra.mxu3 %v2320_v42  ;;  %v2420_v2 = vor.u32 %v3138_v57, %v2417_v58  ;;  %v2392_v8 = vor.u32 %v3133_v1, %v2391_v0  ;;  %v2351_v28 = vld [vmem:[#allocation11 + $0x80] sm:$0xf]  ;;  %v2300_v29 = vor.u32 %v3108_v26, %v2297_v27  ;;  %v3122_v30 = vld [vmem:[#allocation11 + $0x88] sm:$0xf0]  ;;  %v3149_v36 = vld [vmem:[#allocation11 + $0x160] sm:$0xf0] }
  0x5e   :  { %v2352_v31 = vor.u32 %v3122_v30, %v2351_v28  ;;  %v3105_v38 = vld [vmem:[#allocation11 + $0x4] sm:$0xf]  ;;  %v2285_v39 = vld [vmem:[#allocation11 + $0xc] sm:$0xf0]  ;;  %v2339_v40 = vld [vmem:[#allocation11 + $0x68] sm:$0xf] }
  0x5f   :  { %793 = vmatpush.bf16.msrb.mxu1 %v2372_v10  ;;  %v2375_v10 = vld [vmem:[#allocation11 + $0xb0] sm:$0xf]  ;;  %v3119_v42 = vld [vmem:[#allocation11 + $0x70] sm:$0xf0]  ;;  %v3132_v44 = vld [vmem:[#allocation11 + $0xdc] sm:$0xf] }
  0x60   :  { %781 = vmatpush.bf16.msrb.mxu0 %v2452_v7  ;;  %806 = vmatpush.bf16.msrb.mxu2 %v2468_v22  ;;  %v3106_v7 = vld [vmem:[#allocation11 + $0x8] sm:$0xf0]  ;;  %v2376_v20 = vor.u32 %v3128_v13, %v2375_v10  ;;  %v2363_v22 = vld [vmem:[#allocation11 + $0x98] sm:$0xf]  ;;  %v2340_v43 = vor.u32 %v3119_v42, %v2339_v40  ;;  %v2447_v46 = vld [vmem:[#allocation11 + $0x140] sm:$0xf] }
  0x61   :  { %772 = vmatpush.bf16.msra.mxu3 %v2308_v54  ;;  %v2284_v17 = vor.u32 %v3106_v7, %v2283_v6  ;;  %v2364_v25 = vor.u32 %v3125_v23, %v2363_v22  ;;  %v3146_v48 = vld [vmem:[#allocation11 + $0x148] sm:$0xf0]  ;;  %v2327_v50 = vld [vmem:[#allocation11 + $0x50] sm:$0xf]  ;;  %v3116_v51 = vld [vmem:[#allocation11 + $0x58] sm:$0xf0] }
  0x62   :  { %v2448_v49 = vor.u32 %v3146_v48, %v2447_v46  ;;  %v2328_v52 = vor.u32 %v3116_v51, %v2327_v50  ;;  %v2381_v54 = vld [vmem:[#allocation11 + $0xcc] sm:$0xf0]  ;;  %v2435_v55 = vld [vmem:[#allocation11 + $0x128] sm:$0xf]  ;;  %v3143_v57 = vld [vmem:[#allocation11 + $0x130] sm:$0xf0] }
  0x63   :  { %794 = vmatpush.bf16.msrb.mxu1 %v2360_v16  ;;  %v2436_v58 = vor.u32 %v3143_v57, %v2435_v55  ;;  %v2315_v59 = vld [vmem:[#allocation11 + $0x38] sm:$0xf]  ;;  %v2423_v62 = vld [vmem:[#allocation11 + $0x110] sm:$0xf]  ;;  %v2303_v1 = vld [vmem:[#allocation11 + $0x20] sm:$0xf] }
  0x64   :  { %782 = vmatpush.bf16.msrb.mxu0 %v2440_v21  ;;  %807 = vmatpush.bf16.msrb.mxu2 %v2456_v33  ;;  %v2472_v21 = vor.u32 %v3152_v15, %v2471_v14  ;;  %v2405_v33 = vld [vmem:[#allocation11 + $0xfc] sm:$0xf0]  ;;  %v2291_v6 = vld [vmem:[#allocation11 + $0x8] sm:$0xf]  ;;  %v3134_v10 = vld [vmem:[#allocation11 + $0xe8] sm:$0xf0] }
  0x65   :  { %773 = vmatpush.bf16.msra.mxu3 %v2296_v3  ;;  %v2387_v13 = vld [vmem:[#allocation11 + $0xc8] sm:$0xf]  ;;  %v3131_v14 = vld [vmem:[#allocation11 + $0xd0] sm:$0xf0]  ;;  %v3172_v22 = vld [vmem:[#allocation13 + $0x98] sm:$0xf0] }
  0x66   :  { %v2388_v15 = vor.u32 %v3131_v14, %v2387_v13  ;;  %v3169_v27 = vld [vmem:[#allocation13 + $0x80] sm:$0xf0]  ;;  %v2655_v28 = vld [vmem:[#allocation13 + $0x168] sm:$0xf]  ;;  %v2631_v40 = vld [vmem:[#allocation13 + $0x138] sm:$0xf] }
  0x67   :  { %795 = vmatpush.bf16.msrb.mxu1 %v2348_v32  ;;  %v3135_v32 = vld [vmem:[#allocation11 + $0xf4] sm:$0xf]  ;;  %v2511_v46 = vld [vmem:[#allocation13 + $0x48] sm:$0xf]  ;;  %v3190_v55 = vld [vmem:[#allocation13 + $0x128] sm:$0xf0] }
  0x68   :  { %783 = vmatpush.bf16.msrb.mxu0 %v2428_v34  ;;  %808 = vmatpush.bf16.msrb.mxu2 %v2444_v41  ;;  %v2459_v34 = vld [vmem:[#allocation11 + $0x158] sm:$0xf]  ;;  %v2408_v35 = vor.u32 %v3135_v32, %v2405_v33  ;;  %v2288_v41 = vor.u32 %v3105_v38, %v2285_v39  ;;  %v2643_v33 = vld [vmem:[#allocation13 + $0x150] sm:$0xf]  ;;  %v3166_v39 = vld [vmem:[#allocation13 + $0x68] sm:$0xf0] }
  0x69   :  { %774 = vmatpush.bf16.msra.mxu3 %v2284_v17  ;;  %v2460_v37 = vor.u32 %v3149_v36, %v2459_v34  ;;  %v3196_v34 = vld [vmem:[#allocation13 + $0x158] sm:$0xf0]  ;;  %v2523_v36 = vld [vmem:[#allocation13 + $0x60] sm:$0xf]  ;;  %v2751_v51 = vld [vmem:[#allocation13 + $0x228] sm:$0xf] }
  0x6a   :  { %v2524_v48 = vor.u32 %v3166_v39, %v2523_v36  ;;  %v2487_v14 = vld [vmem:[#allocation13 + $0x18] sm:$0xf] }
  0x6b   :  { %796 = vmatpush.bf16.msrb.mxu1 %v2336_v45  ;;  %v2393_v45 = vld [vmem:[#allocation11 + $0xe4] sm:$0xf0] }
  0x6c   :  { %784 = vmatpush.bf16.msrb.mxu0 %v2416_v47  ;;  %809 = vmatpush.bf16.msrb.mxu2 %v2432_v53  ;;  %v2396_v47 = vor.u32 %v3132_v44, %v2393_v45  ;;  %v3129_v53 = vld [vmem:[#allocation11 + $0xc4] sm:$0xf]  ;;  %v3174_v44 = vld [vmem:[#allocation13 + $0xac] sm:$0xf]  ;;  %v2561_v45 = vld [vmem:[#allocation13 + $0xb4] sm:$0xf0] }
  0x6d   :  { %819 = vmatpush.bf16.msrb.mxu3 %v2376_v20  ;;  %v2547_v20 = vld [vmem:[#allocation13 + $0x90] sm:$0xf]  ;;  %v2564_v57 = vor.u32 %v3174_v44, %v2561_v45  ;;  %v2501_v44 = vld [vmem:[#allocation13 + $0x3c] sm:$0xf0] }
  0x6f   :  { %797 = vmatpush.bf16.msrb.mxu1 %v2324_v56  ;;  %v2384_v56 = vor.u32 %v3129_v53, %v2381_v54  ;;  %v2619_v54 = vld [vmem:[#allocation13 + $0x120] sm:$0xf] }
  0x70   :  { %785 = vmatpush.bf16.msrb.mxu0 %v2404_v60  ;;  %810 = vmatpush.bf16.msrb.mxu2 %v2420_v2  ;;  %v3113_v60 = vld [vmem:[#allocation11 + $0x40] sm:$0xf0]  ;;  %v3110_v2 = vld [vmem:[#allocation11 + $0x28] sm:$0xf0] }
  0x71   :  { %820 = vmatpush.bf16.msrb.mxu3 %v2364_v25  ;;  %v2316_v61 = vor.u32 %v3113_v60, %v2315_v59  ;;  %v2304_v3 = vor.u32 %v3110_v2, %v2303_v1  ;;  %v2535_v25 = vld [vmem:[#allocation13 + $0x78] sm:$0xf]  ;;  %v2549_v60 = vld [vmem:[#allocation13 + $0x9c] sm:$0xf0]  ;;  %v3160_v1 = vld [vmem:[#allocation13 + $0x38] sm:$0xf0]  ;;  %v2620_v2 = vor.u32 %v3190_v55, %v2619_v54 }
  0x72   :  { %v3153_v54 = vld [vmem:[#allocation13 + $0x4] sm:$0xf]  ;;  %v2477_v55 = vld [vmem:[#allocation13 + $0xc] sm:$0xf0] }
  0x73   :  { %798 = vmatpush.bf16.msrb.mxu1 %v2312_v4  ;;  %v2411_v4 = vld [vmem:[#allocation11 + $0xf8] sm:$0xf] }
  0x74   :  { %786 = vmatpush.bf16.msrb.mxu0 %v2392_v8  ;;  %811 = vmatpush.bf16.msrb.mxu2 %v2408_v35  ;;  %v3107_v8 = vld [vmem:[#allocation11 + $0x10] sm:$0xf0]  ;;  %v2536_v35 = vor.u32 %v3169_v27, %v2535_v25  ;;  %v2475_v25 = vld [vmem:[#allocation13] sm:$0xf]  ;;  %v3154_v27 = vld [vmem:[#allocation13 + $0x8] sm:$0xf0] }
  0x75   :  { %821 = vmatpush.bf16.msrb.mxu3 %v2352_v31  ;;  %v2292_v11 = vor.u32 %v3107_v8, %v2291_v6  ;;  %v2727_v6 = vld [vmem:[#allocation13 + $0x1f8] sm:$0xf]  ;;  %v2476_v36 = vor.u32 %v3154_v27, %v2475_v25  ;;  %v3205_v25 = vld [vmem:[#allocation13 + $0x1a0] sm:$0xf0] }
  0x77   :  { %799 = vmatpush.bf16.msrb.mxu1 %v2300_v29  ;;  %v3199_v29 = vld [vmem:[#allocation13 + $0x170] sm:$0xf0] }
  0x78   :  { %787 = vmatpush.bf16.msrb.mxu0 %v2380_v18  ;;  %812 = vmatpush.bf16.msrb.mxu2 %v2396_v47  ;;  %v2559_v18 = vld [vmem:[#allocation13 + $0xa8] sm:$0xf]  ;;  %v2656_v30 = vor.u32 %v3199_v29, %v2655_v28  ;;  %v2583_v28 = vld [vmem:[#allocation13 + $0xd8] sm:$0xf]  ;;  %v3181_v29 = vld [vmem:[#allocation13 + $0xe0] sm:$0xf0] }
  0x79   :  { %822 = vmatpush.bf16.msrb.mxu3 %v2340_v43 }
  0x7b   :  { %800 = vmatpush.bf16.msrb.mxu1 %v2288_v41  ;;  %v3193_v41 = vld [vmem:[#allocation13 + $0x140] sm:$0xf0] }
  0x7c   :  { %832 = vmatpush.bf16.msra.mxu0 %v2472_v21  ;;  %813 = vmatpush.bf16.msrb.mxu2 %v2384_v56  ;;  %v2632_v50 = vor.u32 %v3193_v41, %v2631_v40  ;;  %v3195_v41 = vld [vmem:[#allocation13 + $0x154] sm:$0xf] }
  0x7d   :  { %823 = vmatpush.bf16.msrb.mxu3 %v2328_v52  ;;  %v3223_v52 = vld [vmem:[#allocation13 + $0x230] sm:$0xf0] }
  0x7e   :  { %v2752_v56 = vor.u32 %v3223_v52, %v2751_v51  ;;  %v3189_v52 = vld [vmem:[#allocation13 + $0x124] sm:$0xf] }
  0x80   :  { %833 = vmatpush.bf16.msra.mxu0 %v2460_v37  ;;  %v2644_v37 = vor.u32 %v3196_v34, %v2643_v33  ;;  %v2657_v33 = vld [vmem:[#allocation13 + $0x174] sm:$0xf0]  ;;  %v3162_v34 = vld [vmem:[#allocation13 + $0x4c] sm:$0xf] }
  0x81   :  { %824 = vmatpush.bf16.msrb.mxu3 %v2316_v61  ;;  %v2739_v61 = vld [vmem:[#allocation13 + $0x210] sm:$0xf] }
  0x84   :  { %834 = vmatpush.bf16.msra.mxu0 %v2448_v49  ;;  %v3163_v49 = vld [vmem:[#allocation13 + $0x50] sm:$0xf0] }
  0x85   :  { %825 = vmatpush.bf16.msrb.mxu3 %v2304_v3 }
  0x88   :  { %835 = vmatpush.bf16.msra.mxu0 %v2436_v58  ;;  %v3171_v58 = vld [vmem:[#allocation13 + $0x94] sm:$0xf] }
  0x89   :  { %826 = vmatpush.bf16.msrb.mxu3 %v2292_v11  ;;  %v2552_v8 = vor.u32 %v3171_v58, %v2549_v60  ;;  %v2537_v11 = vld [vmem:[#allocation13 + $0x84] sm:$0xf0]  ;;  %v2663_v58 = vld [vmem:[#allocation13 + $0x170] sm:$0xf] }
  0xd8   :  { %v301_v5 = vpop.f32.mrf.mxu0 }
  0xd9   :  { %v302_v9 = vadd.f32 %v3323_v63, %v301_v5  ;;  %v3140_v63 = vld [vmem:[#allocation11 + $0x118] sm:$0xf0]  ;;  %v3137_v5 = vld [vmem:[#allocation11 + $0x100] sm:$0xf0] }
  0xda   :  { %v2424_v0 = vor.u32 %v3140_v63, %v2423_v62  ;;  %v2412_v7 = vor.u32 %v3137_v5, %v2411_v4  ;;  %v3220_v62 = vld [vmem:[#allocation13 + $0x218] sm:$0xf0]  ;;  %v2512_v63 = vor.u32 %v3163_v49, %v2511_v46  ;;  %v2607_v4 = vld [vmem:[#allocation13 + $0x108] sm:$0xf]  ;;  %v3187_v5 = vld [vmem:[#allocation13 + $0x110] sm:$0xf0] }
  0xdb   :  { %v305_v16 = vmax.f32 %v302_v9, 0.0  ;;  %v2399_v9 = vld [vmem:[#allocation11 + $0xe0] sm:$0xf]  ;;  %v2740_v3 = vor.u32 %v3220_v62, %v2739_v61  ;;  %v3192_v46 = vld [vmem:[#allocation13 + $0x13c] sm:$0xf] }
  0xdc   :  { %836 = vmatpush.bf16.msra.mxu0 %v2424_v0  ;;  %v2400_v12 = vor.u32 %v3134_v10, %v2399_v9  ;;  %v2499_v0 = vld [vmem:[#allocation13 + $0x30] sm:$0xf]  ;;  %v3217_v9 = vld [vmem:[#allocation13 + $0x200] sm:$0xf0]  ;;  %v3168_v10 = vld [vmem:[#allocation13 + $0x7c] sm:$0xf] }
  0xdd   :  { %v323_v19 = vpack.c.bf16 %v305_v16, %v305_v16  ;;  %v322_v16 = vld [vmem:[#allocation10] sm:$0x3]  ;;  %v2500_v13 = vor.u32 %v3160_v1, %v2499_v0  ;;  %v2489_v49 = vld [vmem:[#allocation13 + $0x24] sm:$0xf0]  ;;  %v2571_v61 = vld [vmem:[#allocation13 + $0xc0] sm:$0xf] }
  0xde   :  { %v325_v17 = vperm.slane %v322_v16, 0  ;;  %v326_v32 = vperm.slane %v322_v16, 1  ;;  %v3157_v16 = vld [vmem:[#allocation13 + $0x20] sm:$0xf0]  ;;  %v3178_v62 = vld [vmem:[#allocation13 + $0xc8] sm:$0xf0] }
  0xdf   :  { %417 = vmatmul.bf16.vlgmr.msra.gmra.mxu1 %v323_v19  ;;  %430 = vmatmul.bf16.vlgmr.msra.gmra.mxu2 %v323_v19  ;;  %v3175_v19 = vld [vmem:[#allocation13 + $0xb0] sm:$0xf0]  ;;  %v2572_v0 = vor.u32 %v3178_v62, %v2571_v61  ;;  %v2693_v61 = vld [vmem:[#allocation13 + $0x1bc] sm:$0xf0] }
  0xe0   :  { %v303_v24 = vpop.f32.mrf.mxu0  ;;  %837 = vmatpush.bf16.msra.mxu0 %v2412_v7  ;;  %v2560_v21 = vor.u32 %v3175_v19, %v2559_v18  ;;  %1352 = vmatpush.bf16.msra.mxu2 %v2656_v30  ;;  %v3184_v18 = vld [vmem:[#allocation13 + $0xf8] sm:$0xf0]  ;;  %v2540_v19 = vor.u32 %v3168_v10, %v2537_v11  ;;  %v3211_v1 = vld [vmem:[#allocation13 + $0x1d0] sm:$0xf0]  ;;  %v3197_v10 = vld [vmem:[#allocation13 + $0x160] sm:$0xf0] }
  0xe1   :  { %v2548_v24 = vor.u32 %v3172_v22, %v2547_v20  ;;  %v2715_v20 = vld [vmem:[#allocation13 + $0x1e0] sm:$0xf]  ;;  %v3165_v22 = vld [vmem:[#allocation13 + $0x64] sm:$0xf] }
  0xe2   :  { %1339 = vmatpush.bf16.msra.mxu1 %v2560_v21  ;;  %v3214_v21 = vld [vmem:[#allocation13 + $0x1e8] sm:$0xf0]  ;;  %v2543_v62 = vld [vmem:[#allocation13 + $0x80] sm:$0xf] }
  0xe3   :  { %v2716_v30 = vor.u32 %v3214_v21, %v2715_v20  ;;  %v2639_v21 = vld [vmem:[#allocation13 + $0x140] sm:$0xf] }
  0xe4   :  { %838 = vmatpush.bf16.msra.mxu0 %v2400_v12  ;;  %1353 = vmatpush.bf16.msra.mxu2 %v2644_v37  ;;  %v2728_v12 = vor.u32 %v3217_v9, %v2727_v6  ;;  %v2584_v37 = vor.u32 %v3181_v29, %v2583_v28  ;;  %v3222_v6 = vld [vmem:[#allocation13 + $0x22c] sm:$0xf]  ;;  %v2585_v28 = vld [vmem:[#allocation13 + $0xe4] sm:$0xf0]  ;;  %v3216_v29 = vld [vmem:[#allocation13 + $0x1fc] sm:$0xf] }
  0xe6   :  { %1340 = vmatpush.bf16.msra.mxu1 %v2548_v24  ;;  %v2488_v24 = vor.u32 %v3157_v16, %v2487_v14  ;;  %v3183_v14 = vld [vmem:[#allocation13 + $0xf4] sm:$0xf]  ;;  %v2597_v16 = vld [vmem:[#allocation13 + $0xfc] sm:$0xf0] }
  0xe8   :  { %839 = vmatpush.bf16.msra.mxu0 %v2388_v15  ;;  %1354 = vmatpush.bf16.msra.mxu2 %v2632_v50  ;;  %v2608_v15 = vor.u32 %v3187_v5, %v2607_v4 }
  0xea   :  { %1341 = vmatpush.bf16.msra.mxu1 %v2536_v35  ;;  %v2513_v35 = vld [vmem:[#allocation13 + $0x54] sm:$0xf0] }
  0xeb   :  { %v2516_v40 = vor.u32 %v3162_v34, %v2513_v35  ;;  %v3191_v34 = vld [vmem:[#allocation13 + $0x130] sm:$0xf0] }
  0xec   :  { %1355 = vmatpush.bf16.msra.mxu2 %v2620_v2  ;;  %v3186_v2 = vld [vmem:[#allocation13 + $0x10c] sm:$0xf] }
  0xee   :  { %1342 = vmatpush.bf16.msra.mxu1 %v2524_v48  ;;  %v3156_v48 = vld [vmem:[#allocation13 + $0x1c] sm:$0xf] }
  0xef   :  { %v2492_v51 = vor.u32 %v3156_v48, %v2489_v49  ;;  %v3188_v49 = vld [vmem:[#allocation13 + $0x118] sm:$0xf0] }
  0xf0   :  { %1356 = vmatpush.bf16.msra.mxu2 %v2608_v15 }
  0xf2   :  { %1343 = vmatpush.bf16.msra.mxu1 %v2512_v63  ;;  %v2703_v63 = vld [vmem:[#allocation13 + $0x1c8] sm:$0xf] }
  0xf3   :  { %v2704_v4 = vor.u32 %v3211_v1, %v2703_v63  ;;  %v2591_v1 = vld [vmem:[#allocation13 + $0xe0] sm:$0xf] }
  0xf6   :  { %1344 = vmatpush.bf16.msra.mxu1 %v2500_v13  ;;  %v3208_v13 = vld [vmem:[#allocation13 + $0x1b8] sm:$0xf0] }
  0xfa   :  { %1345 = vmatpush.bf16.msra.mxu1 %v2488_v24  ;;  %v2679_v24 = vld [vmem:[#allocation13 + $0x198] sm:$0xf] }
  0xfb   :  { %v2680_v27 = vor.u32 %v3205_v25, %v2679_v24 }
  0xfe   :  { %1346 = vmatpush.bf16.msra.mxu1 %v2476_v36  ;;  %v2667_v36 = vld [vmem:[#allocation13 + $0x180] sm:$0xf] }
 0x15c   :  { %v418_v23 = vpop.f32.mrf.mxu1 }
 0x15d   :  { %v419_v26 = vadd.f32 %v418_v23, %v325_v17  ;;  %v2595_v17 = vld [vmem:[#allocation13 + $0xf0] sm:$0xf] }
 0x15e   :  { %v2525_v23 = vld [vmem:[#allocation13 + $0x6c] sm:$0xf0] }
 0x15f   :  { %v435_v31 = vmax.f32 %v419_v26, 0.0  ;;  %v2596_v26 = vor.u32 %v3184_v18, %v2595_v17  ;;  %v3219_v17 = vld [vmem:[#allocation13 + $0x214] sm:$0xf]  ;;  %v2741_v18 = vld [vmem:[#allocation13 + $0x21c] sm:$0xf0] }
 0x160   :  { %v2744_v20 = vor.u32 %v3219_v17, %v2741_v18  ;;  %v3164_v18 = vld [vmem:[#allocation13 + $0x58] sm:$0xf0] }
 0x161   :  { %v3788_v38 = vpack.c.bf16 %v435_v31, %v435_v31  ;;  %v2528_v31 = vor.u32 %v3165_v22, %v2525_v23  ;;  %1357 = vmatpush.bf16.msra.mxu2 %v2596_v26  ;;  %v3194_v22 = vld [vmem:[#allocation13 + $0x148] sm:$0xf0]  ;;  %v3180_v26 = vld [vmem:[#allocation13 + $0xdc] sm:$0xf] }
 0x162   :  { %v431_v42 = vpop.f32.mrf.mxu2  ;;  %v2640_v23 = vor.u32 %v3194_v22, %v2639_v21  ;;  %v501_v21 = vld [vmem:[%s3830_s6] sm:$0x7]  ;;  %v2507_v22 = vld [vmem:[#allocation13 + $0x38] sm:$0xf] }
 0x163   :  { %v432_v43 = vadd.f32 %v431_v42, %v326_v32  ;;  %775 = vmatmul.bf16.vlgmr.msra.gmra.mxu3 %v3788_v38  ;;  %801 = vmatmul.bf16.vlgmr.msrb.gmra.mxu1 %v3788_v38  ;;  %v3198_v32 = vld [vmem:[#allocation13 + $0x16c] sm:$0xf]  ;;  %v2645_v42 = vld [vmem:[#allocation13 + $0x15c] sm:$0xf0]  ;;  %v505_v24 = vperm.slane %v501_v21, 0 }
 0x164   :  { %v420_v47 = vpop.f32.mrf.mxu1  ;;  %1365 = vmatpush.bf16.msra.mxu3 %v2752_v56  ;;  %v2660_v39 = vor.u32 %v3198_v32, %v2657_v33  ;;  %v2627_v33 = vld [vmem:[#allocation13 + $0x128] sm:$0xf] }
 0x165   :  { %v436_v53 = vmax.f32 %v432_v43, 0.0  ;;  %v3159_v43 = vld [vmem:[#allocation13 + $0x34] sm:$0xf]  ;;  %1358 = vmatpush.bf16.msra.mxu2 %v2584_v37  ;;  %v2633_v47 = vld [vmem:[#allocation13 + $0x144] sm:$0xf0]  ;;  %v2628_v35 = vor.u32 %v3191_v34, %v2627_v33 }
 0x166   :  { %1391 = vmatpush.bf16.msrb.mxu1 %v2660_v39  ;;  %v2504_v45 = vor.u32 %v3159_v43, %v2501_v44  ;;  %v2636_v50 = vor.u32 %v3192_v46, %v2633_v47  ;;  %v3202_v37 = vld [vmem:[#allocation13 + $0x188] sm:$0xf0]  ;;  %v3177_v39 = vld [vmem:[#allocation13 + $0xc4] sm:$0xf]  ;;  %v2717_v43 = vld [vmem:[#allocation13 + $0x1ec] sm:$0xf0] }
 0x167   :  { %v3792_v59 = vpack.c.bf16 %v436_v53, %v436_v53  ;;  %v2621_v53 = vld [vmem:[#allocation13 + $0x12c] sm:$0xf0]  ;;  %v3176_v46 = vld [vmem:[#allocation13 + $0xb8] sm:$0xf0]  ;;  %v2483_v34 = vld [vmem:[#allocation13 + $0x8] sm:$0xf] }
 0x168   :  { %1366 = vmatpush.bf16.msra.mxu3 %v2740_v3  ;;  %v2624_v56 = vor.u32 %v3189_v52, %v2621_v53  ;;  %v2609_v3 = vld [vmem:[#allocation13 + $0x114] sm:$0xf0]  ;;  %v2615_v47 = vld [vmem:[#allocation13 + $0x110] sm:$0xf] }
 0x169   :  { %788 = vmatmul.bf16.vlgmr.msrb.gmra.mxu0 %v3792_v59  ;;  %814 = vmatmul.bf16.vlgmr.msrb.gmra.mxu2 %v3792_v59  ;;  %v2612_v5 = vor.u32 %v3186_v2, %v2609_v3  ;;  %v2705_v52 = vld [vmem:[#allocation13 + $0x1d4] sm:$0xf0]  ;;  %v3182_v2 = vld [vmem:[#allocation13 + $0xe8] sm:$0xf0] }
 0x16a   :  { %v433_v7 = vpop.f32.mrf.mxu2  ;;  %1378 = vmatpush.bf16.msrb.mxu0 %v2564_v57  ;;  %v2480_v57 = vor.u32 %v3153_v54, %v2477_v55  ;;  %1359 = vmatpush.bf16.msra.mxu2 %v2572_v0  ;;  %v2555_v53 = vld [vmem:[#allocation13 + $0x98] sm:$0xf]  ;;  %v3173_v55 = vld [vmem:[#allocation13 + $0xa0] sm:$0xf0]  ;;  %v3170_v0 = vld [vmem:[#allocation13 + $0x88] sm:$0xf0] }
 0x16b   :  { %v2753_v7 = vld [vmem:[#allocation13 + $0x234] sm:$0xf0]  ;;  %v2544_v3 = vor.u32 %v3170_v0, %v2543_v62 }
 0x16c   :  { %1367 = vmatpush.bf16.msra.mxu3 %v2728_v12  ;;  %v2756_v9 = vor.u32 %v3222_v6, %v2753_v7  ;;  %v2691_v12 = vld [vmem:[#allocation13 + $0x1b0] sm:$0xf]  ;;  %v2681_v6 = vld [vmem:[#allocation13 + $0x1a4] sm:$0xf0] }
 0x16d   :  { %v2692_v15 = vor.u32 %v3208_v13, %v2691_v12  ;;  %v2531_v7 = vld [vmem:[#allocation13 + $0x68] sm:$0xf] }
 0x16e   :  { %1379 = vmatpush.bf16.msrb.mxu0 %v2552_v8  ;;  %v2651_v8 = vld [vmem:[#allocation13 + $0x158] sm:$0xf]  ;;  %1404 = vmatpush.bf16.msrb.mxu2 %v2756_v9  ;;  %v3167_v9 = vld [vmem:[#allocation13 + $0x70] sm:$0xf0] }
 0x16f   :  { %v2652_v11 = vor.u32 %v3197_v10, %v2651_v8  ;;  %v2579_v10 = vld [vmem:[#allocation13 + $0xc8] sm:$0xf]  ;;  %v2532_v12 = vor.u32 %v3167_v9, %v2531_v7 }
 0x170   :  { %1368 = vmatpush.bf16.msra.mxu3 %v2716_v30  ;;  %v2729_v30 = vld [vmem:[#allocation13 + $0x204] sm:$0xf0] }
 0x171   :  { %v2732_v32 = vor.u32 %v3216_v29, %v2729_v30 }
 0x172   :  { %1380 = vmatpush.bf16.msrb.mxu0 %v2540_v19  ;;  %v2600_v19 = vor.u32 %v3183_v14, %v2597_v16  ;;  %1405 = vmatpush.bf16.msrb.mxu2 %v2744_v20  ;;  %v3201_v14 = vld [vmem:[#allocation13 + $0x184] sm:$0xf]  ;;  %v2519_v16 = vld [vmem:[#allocation13 + $0x50] sm:$0xf] }
 0x173   :  { %827 = vmatmul.bf16.vlgmr.msrb.gmra.mxu3 %v3788_v38  ;;  %v2648_v38 = vor.u32 %v3195_v41, %v2645_v42  ;;  %v2573_v41 = vld [vmem:[#allocation13 + $0xcc] sm:$0xf0]  ;;  %v3213_v42 = vld [vmem:[#allocation13 + $0x1e4] sm:$0xf]  ;;  %v2520_v20 = vor.u32 %v3164_v18, %v2519_v16 }
 0x174   :  { %1369 = vmatpush.bf16.msra.mxu3 %v2704_v4  ;;  %v2576_v44 = vor.u32 %v3177_v39, %v2573_v41  ;;  %v2592_v4 = vor.u32 %v3182_v2, %v2591_v1  ;;  %v3224_v39 = vld [vmem:[#allocation13 + $0x238] sm:$0xf0]  ;;  %v3215_v1 = vld [vmem:[#allocation13 + $0x1f0] sm:$0xf0]  ;;  %v2803_v2 = vld [vmem:[#allocation14 + $0x50] sm:$0xf] }
 0x175   :  { %1392 = vmatpush.bf16.msrb.mxu1 %v2648_v38  ;;  %v2720_v38 = vor.u32 %v3213_v42, %v2717_v43 }
 0x176   :  { %1381 = vmatpush.bf16.msrb.mxu0 %v2528_v31  ;;  %v2588_v31 = vor.u32 %v3180_v26, %v2585_v28  ;;  %1406 = vmatpush.bf16.msrb.mxu2 %v2732_v32  ;;  %v2495_v26 = vld [vmem:[#allocation13 + $0x20] sm:$0xf] }
 0x178   :  { %1370 = vmatpush.bf16.msra.mxu3 %v2692_v15  ;;  %v2669_v15 = vld [vmem:[#allocation13 + $0x18c] sm:$0xf0] }
 0x179   :  { %840 = vmatmul.bf16.vlgmr.msra.gmra.mxu0 %v3792_v59  ;;  %1393 = vmatpush.bf16.msrb.mxu1 %v2636_v50  ;;  %v3200_v59 = vld [vmem:[#allocation13 + $0x178] sm:$0xf0]  ;;  %v2616_v50 = vor.u32 %v3188_v49, %v2615_v47  ;;  %v2672_v17 = vor.u32 %v3201_v14, %v2669_v15  ;;  %v3221_v47 = vld [vmem:[#allocation13 + $0x220] sm:$0xf0]  ;;  %v2795_v14 = vld [vmem:[#allocation14 + $0x40] sm:$0xf] }
 0x17a   :  { %1382 = vmatpush.bf16.msrb.mxu0 %v2516_v40  ;;  %v2664_v60 = vor.u32 %v3200_v59, %v2663_v58  ;;  %v2668_v40 = vor.u32 %v3202_v37, %v2667_v36  ;;  %1407 = vmatpush.bf16.msrb.mxu2 %v2720_v38  ;;  %v2556_v58 = vor.u32 %v3173_v55, %v2555_v53  ;;  %v2759_v37 = vld [vmem:[#allocation13 + $0x230] sm:$0xf]  ;;  %v3234_v15 = vld [vmem:[#allocation14 + $0x44] sm:$0xf0] }
 0x17c   :  { %1371 = vmatpush.bf16.msra.mxu3 %v2680_v27  ;;  %v3158_v27 = vld [vmem:[#allocation13 + $0x28] sm:$0xf0] }
 0x17d   :  { %1394 = vmatpush.bf16.msrb.mxu1 %v2624_v56  ;;  %v2603_v56 = vld [vmem:[#allocation13 + $0xf8] sm:$0xf]  ;;  %v2496_v30 = vor.u32 %v3158_v27, %v2495_v26  ;;  %v3254_v26 = vld [vmem:[#allocation14 + $0xe4] sm:$0xf0] }
 0x17e   :  { %1383 = vmatpush.bf16.msrb.mxu0 %v2504_v45  ;;  %v2567_v45 = vld [vmem:[#allocation13 + $0xb0] sm:$0xf] }
 0x17f   :  { %v2568_v48 = vor.u32 %v3176_v46, %v2567_v45  ;;  %v2747_v46 = vld [vmem:[#allocation13 + $0x218] sm:$0xf] }
 0x180   :  { %1372 = vmatpush.bf16.msra.mxu3 %v2668_v40  ;;  %v2748_v53 = vor.u32 %v3221_v47, %v2747_v46  ;;  %v3250_v46 = vld [vmem:[#allocation14 + $0xc4] sm:$0xf0]  ;;  %v3237_v47 = vld [vmem:[#allocation14 + $0x64] sm:$0xf] }
 0x181   :  { %1395 = vmatpush.bf16.msrb.mxu1 %v2612_v5  ;;  %v3204_v5 = vld [vmem:[#allocation13 + $0x19c] sm:$0xf] }
 0x182   :  { %1384 = vmatpush.bf16.msrb.mxu0 %v2492_v51  ;;  %v3210_v51 = vld [vmem:[#allocation13 + $0x1cc] sm:$0xf]  ;;  %v2684_v8 = vor.u32 %v3204_v5, %v2681_v6 }
 0x183   :  { %v2708_v54 = vor.u32 %v3210_v51, %v2705_v52  ;;  %v2819_v51 = vld [vmem:[#allocation14 + $0x70] sm:$0xf]  ;;  %v3240_v52 = vld [vmem:[#allocation14 + $0x74] sm:$0xf0] }
 0x184   :  { %1417 = vmatpush.bf16.msrb.mxu3 %v2568_v48  ;;  %v2820_v55 = vor.u32 %v3240_v52, %v2819_v51  ;;  %v3230_v51 = vld [vmem:[#allocation14 + $0x24] sm:$0xf0] }
 0x185   :  { %1396 = vmatpush.bf16.msrb.mxu1 %v2600_v19  ;;  %1408 = vmatpush.bf16.msrb.mxu2 %v2708_v54  ;;  %v2735_v54 = vld [vmem:[#allocation13 + $0x200] sm:$0xf] }
 0x186   :  { %1385 = vmatpush.bf16.msrb.mxu0 %v2480_v57  ;;  %v3185_v57 = vld [vmem:[#allocation13 + $0x100] sm:$0xf0] }
 0x187   :  { %v2604_v59 = vor.u32 %v3185_v57, %v2603_v56  ;;  %v3218_v57 = vld [vmem:[#allocation13 + $0x208] sm:$0xf0] }
 0x188   :  { %1418 = vmatpush.bf16.msrb.mxu3 %v2556_v58  ;;  %v2811_v58 = vld [vmem:[#allocation14 + $0x60] sm:$0xf]  ;;  %v2736_v62 = vor.u32 %v3218_v57, %v2735_v54  ;;  %v2851_v54 = vld [vmem:[#allocation14 + $0xb0] sm:$0xf] }
 0x189   :  { %1397 = vmatpush.bf16.msrb.mxu1 %v2588_v31  ;;  %v506_v31 = vperm.slane %v501_v21, 1 }
 0x18a   :  { %1430 = vmatpush.bf16.msra.mxu0 %v2664_v60  ;;  %v3207_v60 = vld [vmem:[#allocation13 + $0x1b4] sm:$0xf] }
 0x18b   :  { %v2696_v63 = vor.u32 %v3207_v60, %v2693_v61  ;;  %v507_v60 = vperm.slane %v501_v21, 2 }
 0x18c   :  { %1419 = vmatpush.bf16.msrb.mxu3 %v2544_v3  ;;  %v3236_v3 = vld [vmem:[#allocation14 + $0x54] sm:$0xf0] }
 0x18d   :  { %1398 = vmatpush.bf16.msrb.mxu1 %v2576_v44  ;;  %1409 = vmatpush.bf16.msrb.mxu2 %v2696_v63  ;;  %v2760_v44 = vor.u32 %v3224_v39, %v2759_v37  ;;  %v2723_v63 = vld [vmem:[#allocation13 + $0x1e8] sm:$0xf]  ;;  %v3239_v37 = vld [vmem:[#allocation14 + $0x74] sm:$0xf]  ;;  %v2821_v39 = vld [vmem:[#allocation14 + $0x78] sm:$0xf0] }
 0x18e   :  { %1431 = vmatpush.bf16.msra.mxu0 %v2652_v11  ;;  %v3179_v11 = vld [vmem:[#allocation13 + $0xd0] sm:$0xf0]  ;;  %v2724_v7 = vor.u32 %v3215_v1, %v2723_v63  ;;  %v3246_v63 = vld [vmem:[#allocation14 + $0xa4] sm:$0xf0]  ;;  %v2797_v1 = vld [vmem:[#allocation14 + $0x48] sm:$0xf0] }
 0x18f   :  { %v2580_v13 = vor.u32 %v3179_v11, %v2579_v10  ;;  %v2711_v10 = vld [vmem:[#allocation13 + $0x1d0] sm:$0xf]  ;;  %v3212_v11 = vld [vmem:[#allocation13 + $0x1d8] sm:$0xf0] }
 0x190   :  { %1420 = vmatpush.bf16.msrb.mxu3 %v2532_v12  ;;  %v2883_v12 = vld [vmem:[#allocation14 + $0xf0] sm:$0xf] }
 0x191   :  { %1410 = vmatpush.bf16.msrb.mxu2 %v2684_v8  ;;  %v2804_v8 = vor.u32 %v3236_v3, %v2803_v2 }
 0x192   :  { %1432 = vmatpush.bf16.msra.mxu0 %v2640_v23  ;;  %v3161_v23 = vld [vmem:[#allocation13 + $0x40] sm:$0xf0] }
 0x193   :  { %v2508_v25 = vor.u32 %v3161_v23, %v2507_v22  ;;  %v2796_v22 = vor.u32 %v3234_v15, %v2795_v14  ;;  %v2885_v14 = vld [vmem:[#allocation14 + $0xf8] sm:$0xf0] }
 0x194   :  { %1421 = vmatpush.bf16.msrb.mxu3 %v2520_v20  ;;  %v3209_v20 = vld [vmem:[#allocation13 + $0x1c0] sm:$0xf0] }
 0x195   :  { %1411 = vmatpush.bf16.msrb.mxu2 %v2672_v17  ;;  %v2712_v17 = vor.u32 %v3212_v11, %v2711_v10  ;;  %v2789_v10 = vld [vmem:[#allocation14 + $0x38] sm:$0xf0] }
 0x196   :  { %1433 = vmatpush.bf16.msra.mxu0 %v2628_v35  ;;  %v3155_v35 = vld [vmem:[#allocation13 + $0x10] sm:$0xf0] }
 0x197   :  { %v2484_v40 = vor.u32 %v3155_v35, %v2483_v34  ;;  %v2675_v34 = vld [vmem:[#allocation13 + $0x188] sm:$0xf]  ;;  %v3203_v35 = vld [vmem:[#allocation13 + $0x190] sm:$0xf0] }
 0x198   :  { %1422 = vmatpush.bf16.msrb.mxu3 %v2508_v25  ;;  %v2875_v25 = vld [vmem:[#allocation14 + $0xe0] sm:$0xf] }
 0x19a   :  { %1434 = vmatpush.bf16.msra.mxu0 %v2616_v50 }
 0x19c   :  { %1423 = vmatpush.bf16.msrb.mxu3 %v2496_v30  ;;  %v2876_v30 = vor.u32 %v3254_v26, %v2875_v25  ;;  %v2877_v25 = vld [vmem:[#allocation14 + $0xe8] sm:$0xf0] }
 0x19e   :  { %1435 = vmatpush.bf16.msra.mxu0 %v2604_v59  ;;  %v3238_v59 = vld [vmem:[#allocation14 + $0x64] sm:$0xf0] }
 0x19f   :  { %v2812_v0 = vor.u32 %v3238_v59, %v2811_v58  ;;  %v2771_v59 = vld [vmem:[#allocation14 + $0x10] sm:$0xf] }
 0x1a0   :  { %1424 = vmatpush.bf16.msrb.mxu3 %v2484_v40  ;;  %v2676_v40 = vor.u32 %v3203_v35, %v2675_v34  ;;  %v2773_v35 = vld [vmem:[#allocation14 + $0x18] sm:$0xf0] }
 0x1a2   :  { %1436 = vmatpush.bf16.msra.mxu0 %v2592_v4 }
 0x1a6   :  { %1437 = vmatpush.bf16.msra.mxu0 %v2580_v13  ;;  %v3256_v13 = vld [vmem:[#allocation14 + $0xf4] sm:$0xf0] }
 0x1a7   :  { %v2884_v21 = vor.u32 %v3256_v13, %v2883_v12  ;;  %v3255_v13 = vld [vmem:[#allocation14 + $0xf4] sm:$0xf] }
 0x1a8   :  { %v2888_v15 = vor.u32 %v3255_v13, %v2885_v14  ;;  %v3243_v13 = vld [vmem:[#allocation14 + $0x94] sm:$0xf] }
 0x1e0   :  { %v802_v19 = vpop.f32.mrf.mxu1 }
 0x1e1   :  { %v803_v41 = vadd.f32 %v802_v19, %v506_v31  ;;  %v2699_v19 = vld [vmem:[#allocation13 + $0x1b8] sm:$0xf]  ;;  %v2867_v31 = vld [vmem:[#allocation14 + $0xd0] sm:$0xf] }
 0x1e2   :  { %v2700_v27 = vor.u32 %v3209_v20, %v2699_v19  ;;  %v2947_v19 = vld [vmem:[#allocation14 + $0x170] sm:$0xf]  ;;  %v3272_v20 = vld [vmem:[#allocation14 + $0x174] sm:$0xf0] }
 0x1e6   :  { %v776_v28 = vpop.f32.mrf.mxu3  ;;  %v789_v29 = vpop.f32.mrf.mxu0 }
 0x1e7   :  { %v777_v32 = vadd.f32 %v776_v28, %v505_v24  ;;  %v2687_v28 = vld [vmem:[#allocation13 + $0x1a0] sm:$0xf] }
 0x1e8   :  { %v804_v33 = vpop.f32.mrf.mxu1 }
 0x1e9   :  { %v790_v36 = vadd.f32 %v789_v29, %v777_v32  ;;  %v3206_v29 = vld [vmem:[#allocation13 + $0x1a8] sm:$0xf0]  ;;  %v3252_v32 = vld [vmem:[#allocation14 + $0xd4] sm:$0xf0] }
 0x1ea   :  { %v2688_v33 = vor.u32 %v3206_v29, %v2687_v28  ;;  %v3271_v28 = vld [vmem:[#allocation14 + $0x174] sm:$0xf]  ;;  %v2949_v29 = vld [vmem:[#allocation14 + $0x178] sm:$0xf0] }
 0x1eb   :  { %v845_v42 = vmax.f32 %v790_v36, 0.0  ;;  %v2868_v36 = vor.u32 %v3252_v32, %v2867_v31  ;;  %v2939_v31 = vld [vmem:[#allocation14 + $0x160] sm:$0xf]  ;;  %v3270_v32 = vld [vmem:[#allocation14 + $0x164] sm:$0xf0] }
 0x1ec   :  { %v815_v43 = vpop.f32.mrf.mxu2  ;;  %v2940_v34 = vor.u32 %v3270_v32, %v2939_v31  ;;  %v944_v32 = vld [vmem:[%s3832_s8] sm:$0x7] }
 0x1ed   :  { %v3801_v38 = vpack.c.bf16 %v845_v42, %v845_v42  ;;  %v816_v45 = vadd.f32 %v815_v43, %v803_v41  ;;  %v2824_v41 = vor.u32 %v3239_v37, %v2821_v39  ;;  %v2787_v42 = vld [vmem:[#allocation14 + $0x30] sm:$0xf]  ;;  %v3232_v43 = vld [vmem:[#allocation14 + $0x34] sm:$0xf0]  ;;  %v2869_v37 = vld [vmem:[#allocation14 + $0xd8] sm:$0xf0] }
 0x1ee   :  { %v778_v48 = vpop.f32.mrf.mxu3  ;;  %v791_v49 = vpop.f32.mrf.mxu0 }
 0x1ef   :  { %v846_v50 = vmax.f32 %v816_v45, 0.0  ;;  %1347 = vmatmul.bf16.vlgmr.msra.gmra.mxu1 %v3801_v38  ;;  %1386 = vmatmul.bf16.vlgmr.msrb.gmra.mxu0 %v3801_v38  ;;  %v2788_v45 = vor.u32 %v3232_v43, %v2787_v42  ;;  %v2813_v49 = vld [vmem:[#allocation14 + $0x68] sm:$0xf0] }
 0x1f0   :  { %1443 = vmatpush.bf16.msra.mxu1 %v2760_v44  ;;  %v2859_v44 = vld [vmem:[#allocation14 + $0xc0] sm:$0xf]  ;;  %v2816_v52 = vor.u32 %v3237_v47, %v2813_v49  ;;  %v2941_v42 = vld [vmem:[#allocation14 + $0x168] sm:$0xf0]  ;;  %v3249_v49 = vld [vmem:[#allocation14 + $0xc4] sm:$0xf] }
 0x1f1   :  { %v946_v56 = vpack.c.bf16 %v846_v50, %v846_v50  ;;  %v2860_v48 = vor.u32 %v3250_v46, %v2859_v44  ;;  %v2779_v50 = vld [vmem:[#allocation14 + $0x20] sm:$0xf]  ;;  %v2931_v44 = vld [vmem:[#allocation14 + $0x150] sm:$0xf]  ;;  %v3225_v46 = vld [vmem:[#allocation14 + $0x4] sm:$0xf] }
 0x1f3   :  { %1360 = vmatmul.bf16.vlgmr.msra.gmra.mxu2 %v946_v56 }
 0x1f4   :  { %v817_v61 = vpop.f32.mrf.mxu2  ;;  %1444 = vmatpush.bf16.msra.mxu1 %v2748_v53  ;;  %1756 = vmatpush.bf16.msra.mxu2 %v2820_v55  ;;  %v2780_v53 = vor.u32 %v3230_v51, %v2779_v50  ;;  %v3248_v55 = vld [vmem:[#allocation14 + $0xb4] sm:$0xf0]  ;;  %v2861_v50 = vld [vmem:[#allocation14 + $0xc8] sm:$0xf0] }
 0x1f5   :  { %v2852_v57 = vor.u32 %v3248_v55, %v2851_v54  ;;  %v2843_v61 = vld [vmem:[#allocation14 + $0xa0] sm:$0xf]  ;;  %v2933_v54 = vld [vmem:[#allocation14 + $0x158] sm:$0xf0] }
 0x1f6   :  { %v828_v4 = vpop.f32.mrf.mxu3  ;;  %v841_v5 = vpop.f32.mrf.mxu0  ;;  %v2844_v2 = vor.u32 %v3246_v63, %v2843_v61  ;;  %v2925_v61 = vld [vmem:[#allocation14 + $0x148] sm:$0xf0] }
 0x1f7   :  { %v829_v6 = vadd.f32 %v828_v4, %v507_v60  ;;  %v3228_v60 = vld [vmem:[#allocation14 + $0x14] sm:$0xf0]  ;;  %v2763_v4 = vld [vmem:[#allocation14] sm:$0xf] }
 0x1f8   :  { %1445 = vmatpush.bf16.msra.mxu1 %v2736_v62  ;;  %1757 = vmatpush.bf16.msra.mxu2 %v2812_v0  ;;  %v2772_v62 = vor.u32 %v3228_v60, %v2771_v59  ;;  %v3233_v0 = vld [vmem:[#allocation14 + $0x44] sm:$0xf]  ;;  %v2853_v59 = vld [vmem:[#allocation14 + $0xb8] sm:$0xf0] }
 0x1f9   :  { %v842_v9 = vadd.f32 %v841_v5, %v829_v6  ;;  %v2800_v3 = vor.u32 %v3233_v0, %v2797_v1  ;;  %v3226_v5 = vld [vmem:[#allocation14 + $0x4] sm:$0xf0]  ;;  %v2835_v6 = vld [vmem:[#allocation14 + $0x90] sm:$0xf]  ;;  %v3265_v60 = vld [vmem:[#allocation14 + $0x144] sm:$0xf] }
 0x1fa   :  { %v2928_v63 = vor.u32 %v3265_v60, %v2925_v61 }
 0x1fb   :  { %v847_v16 = vmax.f32 %v842_v9, 0.0  ;;  %v3231_v9 = vld [vmem:[#allocation14 + $0x34] sm:$0xf] }
 0x1fc   :  { %1446 = vmatpush.bf16.msra.mxu1 %v2724_v7  ;;  %1758 = vmatpush.bf16.msra.mxu2 %v2804_v8  ;;  %v2764_v7 = vor.u32 %v3226_v5, %v2763_v4  ;;  %v3244_v8 = vld [vmem:[#allocation14 + $0x94] sm:$0xf0]  ;;  %v2792_v12 = vor.u32 %v3231_v9, %v2789_v10  ;;  %v3245_v4 = vld [vmem:[#allocation14 + $0xa4] sm:$0xf] }
 0x1fd   :  { %v947_v18 = vpack.c.bf16 %v847_v16, %v847_v16  ;;  %v2836_v11 = vor.u32 %v3244_v8, %v2835_v6  ;;  %v2827_v16 = vld [vmem:[#allocation14 + $0x80] sm:$0xf]  ;;  %v2845_v6 = vld [vmem:[#allocation14 + $0xa8] sm:$0xf0]  ;;  %v2917_v8 = vld [vmem:[#allocation14 + $0x138] sm:$0xf0] }
 0x1fe   :  { %v830_v23 = vpop.f32.mrf.mxu3  ;;  %v843_v24 = vpop.f32.mrf.mxu0  ;;  %v2848_v9 = vor.u32 %v3245_v4, %v2845_v6 }
 0x1ff   :  { %1373 = vmatmul.bf16.vlgmr.msra.gmra.mxu3 %v947_v18  ;;  %1399 = vmatmul.bf16.vlgmr.msrb.gmra.mxu1 %v946_v56  ;;  %v2781_v23 = vld [vmem:[#allocation14 + $0x28] sm:$0xf0]  ;;  %v3253_v24 = vld [vmem:[#allocation14 + $0xe4] sm:$0xf] }
 0x200   :  { %1438 = vmatmul.bf16.vlgmr.msra.gmra.mxu0 %v946_v56  ;;  %1447 = vmatpush.bf16.msra.mxu1 %v2712_v17  ;;  %v3235_v56 = vld [vmem:[#allocation14 + $0x54] sm:$0xf]  ;;  %v3242_v17 = vld [vmem:[#allocation14 + $0x84] sm:$0xf0] }
 0x201   :  { %1769 = vmatpush.bf16.msra.mxu3 %v2884_v21  ;;  %1759 = vmatpush.bf16.msra.mxu2 %v2796_v22  ;;  %v3229_v21 = vld [vmem:[#allocation14 + $0x24] sm:$0xf]  ;;  %v2948_v22 = vor.u32 %v3272_v20, %v2947_v19 }
 0x202   :  { %v2784_v26 = vor.u32 %v3229_v21, %v2781_v23  ;;  %v3260_v23 = vld [vmem:[#allocation14 + $0x114] sm:$0xf0] }
 0x203   :  { %1412 = vmatmul.bf16.vlgmr.msrb.gmra.mxu2 %v947_v18  ;;  %1782 = vmatpush.bf16.msrb.mxu0 %v2948_v22  ;;  %v2899_v22 = vld [vmem:[#allocation14 + $0x110] sm:$0xf] }
 0x204   :  { %1448 = vmatpush.bf16.msra.mxu1 %v2700_v27  ;;  %v2880_v27 = vor.u32 %v3253_v24, %v2877_v25  ;;  %v3241_v24 = vld [vmem:[#allocation14 + $0x84] sm:$0xf]  ;;  %v2900_v25 = vor.u32 %v3260_v23, %v2899_v22  ;;  %v3296_v23 = vld [vmem:[#allocation17 + $0x38] sm:$0xff] }
 0x205   :  { %1770 = vmatpush.bf16.msra.mxu3 %v2876_v30  ;;  %1760 = vmatpush.bf16.msra.mxu2 %v2788_v45  ;;  %v2952_v30 = vor.u32 %v3271_v28, %v2949_v29  ;;  %v3268_v45 = vld [vmem:[#allocation14 + $0x154] sm:$0xf0]  ;;  %v2901_v28 = vld [vmem:[#allocation14 + $0x118] sm:$0xf0] }
 0x206   :  { %v2932_v47 = vor.u32 %v3268_v45, %v2931_v44 }
 0x207   :  { %1783 = vmatpush.bf16.msrb.mxu0 %v2940_v34  ;;  %v3258_v34 = vld [vmem:[#allocation14 + $0x104] sm:$0xf0] }
 0x208   :  { %1449 = vmatpush.bf16.msra.mxu1 %v2688_v33  ;;  %v3227_v33 = vld [vmem:[#allocation14 + $0x14] sm:$0xf] }
 0x209   :  { %1771 = vmatpush.bf16.msra.mxu3 %v2868_v36  ;;  %1761 = vmatpush.bf16.msra.mxu2 %v2780_v53  ;;  %v3251_v36 = vld [vmem:[#allocation14 + $0xd4] sm:$0xf]  ;;  %v2776_v39 = vor.u32 %v3227_v33, %v2773_v35  ;;  %v2891_v33 = vld [vmem:[#allocation14 + $0x100] sm:$0xf]  ;;  %v3257_v35 = vld [vmem:[#allocation14 + $0x104] sm:$0xf] }
 0x20a   :  { %v3267_v53 = vld [vmem:[#allocation14 + $0x154] sm:$0xf] }
 0x20b   :  { %1784 = vmatpush.bf16.msrb.mxu0 %v2932_v47  ;;  %v2936_v55 = vor.u32 %v3267_v53, %v2933_v54 }
 0x20c   :  { %1450 = vmatpush.bf16.msra.mxu1 %v2676_v40  ;;  %v2872_v40 = vor.u32 %v3251_v36, %v2869_v37  ;;  %v2892_v36 = vor.u32 %v3258_v34, %v2891_v33  ;;  %v2893_v37 = vld [vmem:[#allocation14 + $0x108] sm:$0xf0]  ;;  %v3292_v33 = vld [vmem:[#allocation17 + $0x18] sm:$0xff] }
 0x20d   :  { %1772 = vmatpush.bf16.msra.mxu3 %v2860_v48  ;;  %1762 = vmatpush.bf16.msra.mxu2 %v2772_v62  ;;  %v2765_v48 = vld [vmem:[#allocation14 + $0x8] sm:$0xf0] }
 0x20e   :  { %v2768_v51 = vor.u32 %v3225_v46, %v2765_v48  ;;  %v950_v46 = vperm.slane %v944_v32, 1 }
 0x20f   :  { %1425 = vmatmul.bf16.vlgmr.msrb.gmra.mxu3 %v3801_v38  ;;  %1451 = vmatmul.bf16.vlgmr.msra.gmra.mxu1 %v947_v18  ;;  %v2805_v38 = vld [vmem:[#allocation14 + $0x58] sm:$0xf0]  ;;  %v2828_v18 = vor.u32 %v3242_v17, %v2827_v16  ;;  %v3261_v16 = vld [vmem:[#allocation14 + $0x124] sm:$0xf]  ;;  %v2909_v17 = vld [vmem:[#allocation14 + $0x128] sm:$0xf0] }
 0x210   :  { %1795 = vmatpush.bf16.msrb.mxu1 %v2824_v41  ;;  %v2808_v58 = vor.u32 %v3235_v56, %v2805_v38  ;;  %v3269_v41 = vld [vmem:[#allocation14 + $0x164] sm:$0xf]  ;;  %v2923_v56 = vld [vmem:[#allocation14 + $0x140] sm:$0xf]  ;;  %v3247_v38 = vld [vmem:[#allocation14 + $0xb4] sm:$0xf]  ;;  %v2912_v19 = vor.u32 %v3261_v16, %v2909_v17 }
 0x211   :  { %1773 = vmatpush.bf16.msra.mxu3 %v2852_v57  ;;  %1763 = vmatpush.bf16.msra.mxu2 %v2764_v7  ;;  %v2944_v43 = vor.u32 %v3269_v41, %v2941_v42  ;;  %v3266_v57 = vld [vmem:[#allocation14 + $0x144] sm:$0xf0]  ;;  %v2856_v62 = vor.u32 %v3247_v38, %v2853_v59  ;;  %v3263_v7 = vld [vmem:[#allocation14 + $0x134] sm:$0xf]  ;;  %v3284_v16 = vld [vmem:[#allocation16 + $0x58] sm:$0xff] }
 0x212   :  { %v2920_v10 = vor.u32 %v3263_v7, %v2917_v8  ;;  %v3279_v7 = vld [vmem:[#allocation16 + $0x30] sm:$0xff]  ;;  %v3288_v8 = vld [vmem:[#allocation16 + $0x78] sm:$0xff]  ;;  %v3274_v17 = vld [vmem:[#allocation16 + $0x8] sm:$0xff] }
 0x214   :  { %1796 = vmatpush.bf16.msrb.mxu1 %v2816_v52  ;;  %v2864_v52 = vor.u32 %v3249_v49, %v2861_v50 }
 0x215   :  { %1774 = vmatpush.bf16.msra.mxu3 %v2844_v2  ;;  %1808 = vmatpush.bf16.msrb.mxu2 %v2888_v15  ;;  %v2915_v2 = vld [vmem:[#allocation14 + $0x130] sm:$0xf]  ;;  %v2837_v15 = vld [vmem:[#allocation14 + $0x98] sm:$0xf0] }
 0x218   :  { %1797 = vmatpush.bf16.msrb.mxu1 %v2808_v58  ;;  %v2924_v58 = vor.u32 %v3266_v57, %v2923_v56 }
 0x219   :  { %1775 = vmatpush.bf16.msra.mxu3 %v2836_v11  ;;  %1809 = vmatpush.bf16.msrb.mxu2 %v2880_v27  ;;  %v2907_v11 = vld [vmem:[#allocation14 + $0x120] sm:$0xf]  ;;  %v3259_v27 = vld [vmem:[#allocation14 + $0x114] sm:$0xf] }
 0x21a   :  { %1785 = vmatpush.bf16.msrb.mxu0 %v2924_v58  ;;  %v2904_v31 = vor.u32 %v3259_v27, %v2901_v28  ;;  %v3294_v27 = vld [vmem:[#allocation17 + $0x28] sm:$0xff] }
 0x21c   :  { %1798 = vmatpush.bf16.msrb.mxu1 %v2800_v3  ;;  %v3264_v3 = vld [vmem:[#allocation14 + $0x134] sm:$0xf0] }
 0x21d   :  { %1776 = vmatpush.bf16.msra.mxu3 %v2828_v18  ;;  %1810 = vmatpush.bf16.msrb.mxu2 %v2872_v40  ;;  %v2916_v5 = vor.u32 %v3264_v3, %v2915_v2  ;;  %v2840_v18 = vor.u32 %v3243_v13, %v2837_v15  ;;  %v949_v40 = vperm.slane %v944_v32, 0  ;;  %v3276_v13 = vld [vmem:[#allocation16 + $0x18] sm:$0xff]  ;;  %v3275_v15 = vld [vmem:[#allocation16 + $0x10] sm:$0xff] }
 0x21f   :  { %1786 = vmatpush.bf16.msrb.mxu0 %v2916_v5 }
 0x220   :  { %1799 = vmatpush.bf16.msrb.mxu1 %v2792_v12  ;;  %v3262_v12 = vld [vmem:[#allocation14 + $0x124] sm:$0xf0] }
 0x221   :  { %1821 = vmatpush.bf16.msrb.mxu3 %v2952_v30  ;;  %1811 = vmatpush.bf16.msrb.mxu2 %v2864_v52  ;;  %v2908_v14 = vor.u32 %v3262_v12, %v2907_v11  ;;  %v3277_v11 = vld [vmem:[#allocation16 + $0x20] sm:$0xff]  ;;  %v3286_v12 = vld [vmem:[#allocation16 + $0x68] sm:$0xff] }
 0x223   :  { %1787 = vmatpush.bf16.msrb.mxu0 %v2908_v14  ;;  %v3285_v14 = vld [vmem:[#allocation16 + $0x60] sm:$0xff] }
 0x224   :  { %1800 = vmatpush.bf16.msrb.mxu1 %v2784_v26  ;;  %v2829_v26 = vld [vmem:[#allocation14 + $0x88] sm:$0xf0] }
 0x225   :  { %1822 = vmatpush.bf16.msrb.mxu3 %v2944_v43  ;;  %1812 = vmatpush.bf16.msrb.mxu2 %v2856_v62  ;;  %v2832_v30 = vor.u32 %v3241_v24, %v2829_v26  ;;  %v3280_v43 = vld [vmem:[#allocation16 + $0x38] sm:$0xff]  ;;  %v951_v62 = vperm.slane %v944_v32, 2  ;;  %v3295_v24 = vld [vmem:[#allocation17 + $0x30] sm:$0xff] }
 0x227   :  { %1788 = vmatpush.bf16.msrb.mxu0 %v2900_v25 }
 0x228   :  { %1801 = vmatpush.bf16.msrb.mxu1 %v2776_v39  ;;  %v2896_v39 = vor.u32 %v3257_v35, %v2893_v37 }
 0x229   :  { %1823 = vmatpush.bf16.msrb.mxu3 %v2936_v55  ;;  %1813 = vmatpush.bf16.msrb.mxu2 %v2848_v9  ;;  %v3278_v9 = vld [vmem:[#allocation16 + $0x28] sm:$0xff] }
 0x22b   :  { %1789 = vmatpush.bf16.msrb.mxu0 %v2892_v36 }
 0x22c   :  { %1802 = vmatpush.bf16.msrb.mxu1 %v2768_v51 }
 0x22d   :  { %1824 = vmatpush.bf16.msrb.mxu3 %v2928_v63  ;;  %1814 = vmatpush.bf16.msrb.mxu2 %v2840_v18  ;;  %v3283_v18 = vld [vmem:[#allocation16 + $0x50] sm:$0xff] }
 0x22f   :  { %1970 = vmatpush.bf16.msra.mxu0 %v3280_v43 }
 0x230   :  { %1983 = vmatpush.bf16.msra.mxu1 %v3288_v8  ;;  %v3325_v8 = vld [vmem:[%s3838_s14] ss:$0 sm:$0xff] }
 0x231   :  { %1825 = vmatpush.bf16.msrb.mxu3 %v2920_v10  ;;  %1815 = vmatpush.bf16.msrb.mxu2 %v2832_v30  ;;  %v3287_v10 = vld [vmem:[#allocation16 + $0x70] sm:$0xff]  ;;  %v3293_v30 = vld [vmem:[#allocation17 + $0x20] sm:$0xff] }
 0x233   :  { %1971 = vmatpush.bf16.msra.mxu0 %v3279_v7  ;;  %v3297_v7 = vld [vmem:[#allocation19] sm:$0xff] }
 0x234   :  { %1984 = vmatpush.bf16.msra.mxu1 %v3287_v10 }
 0x235   :  { %1826 = vmatpush.bf16.msrb.mxu3 %v2912_v19  ;;  %v3273_v19 = vld [vmem:[#allocation16] sm:$0xff] }
 0x237   :  { %1972 = vmatpush.bf16.msra.mxu0 %v3278_v9 }
 0x238   :  { %1985 = vmatpush.bf16.msra.mxu1 %v3286_v12 }
 0x239   :  { %1827 = vmatpush.bf16.msrb.mxu3 %v2904_v31 }
 0x23b   :  { %1973 = vmatpush.bf16.msra.mxu0 %v3277_v11 }
 0x23c   :  { %1986 = vmatpush.bf16.msra.mxu1 %v3285_v14  ;;  %v3326_v14 = vld [vmem:[%s3840_s16] ss:$0 sm:$0xff] }
 0x23d   :  { %1828 = vmatpush.bf16.msrb.mxu3 %v2896_v39 }
 0x23f   :  { %1974 = vmatpush.bf16.msra.mxu0 %v3276_v13 }
 0x240   :  { %1987 = vmatpush.bf16.msra.mxu1 %v3284_v16 }
 0x243   :  { %1975 = vmatpush.bf16.msra.mxu0 %v3275_v15 }
 0x244   :  { %1988 = vmatpush.bf16.msra.mxu1 %v3283_v18 }
 0x247   :  { %1976 = vmatpush.bf16.msra.mxu0 %v3274_v17 }
 0x24b   :  { %1977 = vmatpush.bf16.msra.mxu0 %v3273_v19 }
 0x26c   :  { %v1348_v0 = vpop.f32.mrf.mxu1  ;;  %v1387_v1 = vpop.f32.mrf.mxu0 }
 0x26d   :  { %v1349_v45 = vadd.f32 %v1348_v0, %v949_v40  ;;  %v1388_v49 = vadd.f32 %v1387_v1, %v950_v46 }
 0x274   :  { %v1350_v20 = vpop.f32.mrf.mxu1  ;;  %v1389_v21 = vpop.f32.mrf.mxu0 }
 0x275   :  { %v3282_v20 = vld [vmem:[#allocation16 + $0x48] sm:$0xff]  ;;  %v3281_v21 = vld [vmem:[#allocation16 + $0x40] sm:$0xff] }
 0x276   :  { %v1361_v29 = vpop.f32.mrf.mxu2  ;;  %1989 = vmatpush.bf16.msra.mxu1 %v3282_v20 }
 0x277   :  { %v1362_v47 = vadd.f32 %v1361_v29, %v1349_v45  ;;  %v1507_v29 = vld [vmem:[%s3834_s10] sm:$0x3] }
 0x278   :  { %v1512_v31 = vperm.slane %v1507_v29, 0  ;;  %v1513_v36 = vperm.slane %v1507_v29, 1 }
 0x27a   :  { %1990 = vmatpush.bf16.msra.mxu1 %v3281_v21 }
 0x27c   :  { %v1400_v41 = vpop.f32.mrf.mxu1 }
 0x27d   :  { %v1439_v42 = vpop.f32.mrf.mxu0  ;;  %v1401_v52 = vadd.f32 %v1400_v41, %v1388_v49 }
 0x27e   :  { %v1363_v44 = vpop.f32.mrf.mxu2 }
 0x282   :  { %v1374_v48 = vpop.f32.mrf.mxu3 }
 0x283   :  { %v1375_v50 = vadd.f32 %v1374_v48, %v1362_v47 }
 0x284   :  { %v1402_v51 = vpop.f32.mrf.mxu1 }
 0x285   :  { %v1456_v53 = vmax.f32 %v1375_v50, 0.0  ;;  %v1441_v54 = vpop.f32.mrf.mxu0 }
 0x286   :  { %v1413_v55 = vpop.f32.mrf.mxu2  ;;  %v3290_v54 = vld [vmem:[#allocation17 + $0x8] sm:$0xff] }
 0x287   :  { %v1508_v56 = vpack.c.bf16 %v1456_v53, %v1456_v53  ;;  %v1414_v57 = vadd.f32 %v1413_v55, %v1401_v52  ;;  %v3291_v53 = vld [vmem:[#allocation17 + $0x10] sm:$0xff]  ;;  %v3289_v55 = vld [vmem:[#allocation17] sm:$0xff] }
 0x289   :  { %v1457_v38 = vmax.f32 %v1414_v57, 0.0  ;;  %1764 = vmatmul.bf16.vlgmr.msra.gmra.mxu2 %v1508_v56  ;;  %1803 = vmatmul.bf16.vlgmr.msrb.gmra.mxu1 %v1508_v56  ;;  %v3304_v56 = vld [vmem:[#allocation19 + $0x38] sm:$0xff]  ;;  %v3303_v57 = vld [vmem:[#allocation19 + $0x30] sm:$0xff] }
 0x28a   :  { %v1376_v58 = vpop.f32.mrf.mxu3  ;;  %2066 = vmatpush.bf16.msra.mxu2 %v3296_v23 }
 0x28b   :  { %v1509_v59 = vpack.c.bf16 %v1457_v38, %v1457_v38  ;;  %v3302_v38 = vld [vmem:[#allocation19 + $0x28] sm:$0xff]  ;;  %v3301_v58 = vld [vmem:[#allocation19 + $0x20] sm:$0xff] }
 0x28c   :  { %v1452_v60 = vpop.f32.mrf.mxu1 }
 0x28d   :  { %1777 = vmatmul.bf16.vlgmr.msra.gmra.mxu3 %v1509_v59 }
 0x28e   :  { %v1415_v61 = vpop.f32.mrf.mxu2  ;;  %2067 = vmatpush.bf16.msra.mxu2 %v3295_v24  ;;  %2149 = vmatpush.bf16.msra.mxu3 %v3304_v56 }
 0x28f   :  { %v3299_v61 = vld [vmem:[#allocation19 + $0x10] sm:$0xff] }
 0x292   :  { %v1426_v63 = vpop.f32.mrf.mxu3  ;;  %2068 = vmatpush.bf16.msra.mxu2 %v3294_v27  ;;  %2150 = vmatpush.bf16.msra.mxu3 %v3303_v57 }
 0x293   :  { %v1427_v0 = vadd.f32 %v1426_v63, %v951_v62  ;;  %v3324_v62 = vld [vmem:[%s3836_s12] ss:$0 sm:$0xff] }
 0x294   :  { %v1454_v1 = vpop.f32.mrf.mxu1 }
 0x295   :  { %v1440_v2 = vadd.f32 %v1439_v42, %v1427_v0 }
 0x296   :  { %2069 = vmatpush.bf16.msra.mxu2 %v3293_v30  ;;  %2151 = vmatpush.bf16.msra.mxu3 %v3302_v38 }
 0x297   :  { %v1453_v3 = vadd.f32 %v1452_v60, %v1440_v2 }
 0x299   :  { %v1458_v4 = vmax.f32 %v1453_v3, 0.0  ;;  %1816 = vmatmul.bf16.vlgmr.msrb.gmra.mxu2 %v1509_v59  ;;  %v3300_v59 = vld [vmem:[#allocation19 + $0x18] sm:$0xff] }
 0x29a   :  { %v1428_v5 = vpop.f32.mrf.mxu3  ;;  %2070 = vmatpush.bf16.msra.mxu2 %v3292_v33  ;;  %2152 = vmatpush.bf16.msra.mxu3 %v3301_v58 }
 0x29b   :  { %v1510_v6 = vpack.c.bf16 %v1458_v4, %v1458_v4 }
 0x29d   :  { %1790 = vmatmul.bf16.vlgmr.msrb.gmra.mxu0 %v1510_v6  ;;  %1829 = vmatmul.bf16.vlgmr.msrb.gmra.mxu3 %v1510_v6  ;;  %v3298_v6 = vld [vmem:[#allocation19 + $0x8] sm:$0xff] }
 0x29e   :  { %2071 = vmatpush.bf16.msra.mxu2 %v3291_v53  ;;  %2153 = vmatpush.bf16.msra.mxu3 %v3300_v59 }
 0x2a2   :  { %2072 = vmatpush.bf16.msra.mxu2 %v3290_v54  ;;  %2154 = vmatpush.bf16.msra.mxu3 %v3299_v61 }
 0x2a6   :  { %2073 = vmatpush.bf16.msra.mxu2 %v3289_v55  ;;  %2155 = vmatpush.bf16.msra.mxu3 %v3298_v6 }
 0x2aa   :  { %2156 = vmatpush.bf16.msra.mxu3 %v3297_v7 }
 0x306   :  { %v1804_v22 = vpop.f32.mrf.mxu1 }
 0x307   :  { %v1805_v42 = vadd.f32 %v1804_v22, %v1513_v36 }
 0x30c   :  { %v1765_v25 = vpop.f32.mrf.mxu2 }
 0x30d   :  { %v1766_v34 = vadd.f32 %v1765_v25, %v1512_v31 }
 0x30e   :  { %v1806_v26 = vpop.f32.mrf.mxu1 }
 0x310   :  { %v1778_v28 = vpop.f32.mrf.mxu3 }
 0x311   :  { %v1779_v37 = vadd.f32 %v1778_v28, %v1766_v34 }
 0x314   :  { %v1767_v32 = vpop.f32.mrf.mxu2 }
 0x318   :  { %v1780_v35 = vpop.f32.mrf.mxu3 }
 0x31a   :  { %v1791_v39 = vpop.f32.mrf.mxu0 }
 0x31b   :  { %v1792_v40 = vadd.f32 %v1791_v39, %v1779_v37 }
 0x31c   :  { %v1817_v41 = vpop.f32.mrf.mxu2 }
 0x31d   :  { %v1834_v43 = vmax.f32 %v1792_v40, 0.0  ;;  %v1818_v45 = vadd.f32 %v1817_v41, %v1805_v42 }
 0x31f   :  { %v1869_v44 = vpack.c.bf16 %v1834_v43, %v1834_v43 }
 0x320   :  { %v1830_v46 = vpop.f32.mrf.mxu3 }
 0x321   :  { %v1831_v47 = vadd.f32 %v1830_v46, %v1818_v45  ;;  %1978 = vmatmul.bf16.vlgmr.msra.gmra.mxu0 %v1869_v44 }
 0x322   :  { %v1793_v48 = vpop.f32.mrf.mxu0 }
 0x323   :  { %v1835_v49 = vmax.f32 %v1831_v47, 0.0 }
 0x324   :  { %v1819_v50 = vpop.f32.mrf.mxu2 }
 0x325   :  { %v1870_v51 = vpack.c.bf16 %v1835_v49, %v1835_v49 }
 0x327   :  { %1991 = vmatmul.bf16.vlgmr.msra.gmra.mxu1 %v1870_v51 }
 0x328   :  { %v1832_v52 = vpop.f32.mrf.mxu3 }
 0x39e   :  { %v1979_v60 = vpop.f32.mrf.mxu0 }
 0x39f   :  { %v1980_v63 = vadd.f32 %v3324_v62, %v1979_v60 }
 0x3a4   :  { %v1992_v0 = vpop.f32.mrf.mxu1 }
 0x3a5   :  { %v1993_v1 = vadd.f32 %v1992_v0, %v1980_v63 }
 0x3a6   :  { %v1981_v2 = vpop.f32.mrf.mxu0 }
 0x3a7   :  { %v1996_v3 = vmax.f32 %v1993_v1, 0.0 }
 0x3a9   :  { %v2014_v4 = vpack.c.bf16 %v1996_v3, %v1996_v3 }
 0x3ab   :  { %2074 = vmatmul.bf16.vlgmr.msra.gmra.mxu2 %v2014_v4 }
 0x3ac   :  { %v1994_v5 = vpop.f32.mrf.mxu1 }
 0x42e   :  { %v2075_v9 = vpop.f32.mrf.mxu2 }
 0x42f   :  { %v2076_v10 = vadd.f32 %v3325_v8, %v2075_v9 }
 0x431   :  { %v2079_v11 = vmax.f32 %v2076_v10, 0.0 }
 0x433   :  { %v2097_v12 = vpack.c.bf16 %v2079_v11, %v2079_v11 }
 0x435   :  { %2157 = vmatmul.bf16.vlgmr.msra.gmra.mxu3 %v2097_v12 }
 0x436   :  { %v2077_v13 = vpop.f32.mrf.mxu2 }
 0x4b8   :  { %v2158_v15 = vpop.f32.mrf.mxu3 }
 0x4b9   :  { %v2159_v16 = vadd.f32 %v3326_v14, %v2158_v15 }
 0x4bb   :  { %2162 = vst [vmem:[#allocation20] sm:$0xff] %v2159_v16 }
 0x4bc   :  { %2173 = dma.vmem_to_hbm [thread:$0]  %s2169_s5, 128, %s2171_s27, [#allocation4]  }
 0x4c0   :  { %v2160_v17 = vpop.f32.mrf.mxu3 }
 0x4c1   :  { %3627 = dma.done.wait [#allocation4], 128  }
 0x4c2   :  { %3628 = vsyncadd [#allocation4], 4294967168 }
 0x4c3   :  { %2178 = vsyncpa [#allocation3], 1 }
 0x4c4   :  { %2179 = vsyncpa [#allocation6], 1 }
 0x4c5   :  { %2180 = vsyncpa [#allocation9], 1 }
 0x4c6   :  { %2181 = vsyncpa [#allocation12], 1 }
 0x4c7   :  { %2182 = vsyncpa [#allocation15], 1 }
 0x4c8   :  { %2183 = vsyncpa [#allocation18], 1 }
 0x4c9   :  { %2184 = vsyncpa [#allocation4], 1 }

</bundles_post_ra>
